<compile_context>
chip_gen: v7x
topology: tpu7x:2x2x1
jax: 0.10.0
libtpu: 0.0.40
codegen_flags: <defaults>
</compile_context>

<pallas_src>
import numpy as np
import jax
import jax.numpy as jnp
from jax.experimental import pallas as pl
from jax.experimental.pallas import tpu as pltpu


def _round_up(x, m):
    return ((x + m - 1) // m) * m


# ----------------------------------------------------------------------------
# Fused kernel: meta_net MLP + conditional prompt bias + (end_signal + pos[EOT])
#               addend + text_projection + L2 normalisation.
# Single invocation (no grid): all operands live in VMEM for the whole call.
# ----------------------------------------------------------------------------
def _fused_prompt_text_kernel(pooled_ref, w1_ref, b1_ref, w2_ref, b2_ref,
                              addend_ref, proj_ref, out_ref):
    # pooled_ref: [B, C] f32 = AvgPool2d((H, W)) of the image features.
    # meta_net: Linear(C, hid) -> ReLU -> Linear(hid, D); hid zero-padded to
    # 128 lanes (exact: padded activations are 0 and padded w2 rows are 0).
    h = jnp.dot(pooled_ref[...].astype(jnp.bfloat16), w1_ref[...],
                preferred_element_type=jnp.float32) + b1_ref[...]           # [B, HIDP]
    h = jnp.maximum(h, 0.0)
    bias = jnp.dot(h.astype(jnp.bfloat16), w2_ref[...],
                   preferred_element_type=jnp.float32) + b2_ref[...]        # [B, D]

    # The EOT row of every assembled class prompt equals end_signal + bias;
    # end_signal + positional_embedding[EOT idx] was folded host-side into
    # `addend`.  Apply text_projection distributively so every matmul is 2-D
    # and no [B, CLS, D] reshape is needed:
    #   (addend + bias) @ P == addend @ P + bias @ P
    add_p = jnp.dot(addend_ref[...].astype(jnp.bfloat16), proj_ref[...],
                    preferred_element_type=jnp.float32)                     # [CLS, DOUT]
    bias_p = jnp.dot(bias.astype(jnp.bfloat16), proj_ref[...],
                     preferred_element_type=jnp.float32)                    # [B, DOUT]

    # TODO(synk): clip_model.transformer + ln_final (frozen external CLIP)
    # omitted from the text-feature path (same reduction as the reference).
    tf = add_p[None, :, :] + bias_p[:, None, :]                             # [B, CLS, DOUT]
    inv = jax.lax.rsqrt(jnp.sum(tf * tf, axis=-1, keepdims=True))
    out_ref[...] = tf * inv


def fused_text_features(pooled, w1, b1, w2, b2, addend, proj):
    B, C = pooled.shape
    HIDP = w1.shape[1]
    CLS, D = addend.shape
    DOUT = proj.shape[1]

    flops = 2 * B * (C * HIDP + HIDP * D + D * DOUT) + 2 * CLS * D * DOUT
    bytes_accessed = (pooled.size * 4 + w1.size * 2 + b1.size * 4
                      + w2.size * 2 + b2.size * 4 + addend.size * 4
                      + proj.size * 2 + B * CLS * DOUT * 4)

    # No grid / no BlockSpecs: every operand is a whole-array VMEM block and
    # the kernel runs exactly once (total VMEM footprint ~1 MiB, fine on
    # v5e / v6e / v7x).  No megacore split: for these sizes one TensorCore
    # step is cheaper than duplicating the weight DMAs on both cores.
    return pl.pallas_call(
        _fused_prompt_text_kernel,
        out_shape=jax.ShapeDtypeStruct((B, CLS, DOUT), jnp.float32),
        cost_estimate=pl.CostEstimate(flops=flops,
                                      transcendentals=B * CLS,
                                      bytes_accessed=bytes_accessed),
    )(pooled, w1, b1, w2, b2, addend, proj)


# ----------------------------------------------------------------------------
# Module (parameters + forward glue)
# ----------------------------------------------------------------------------
class ConditionalLearnablePromptExtractorPallas:
    MAX_LEN = 77

    def __init__(self, prompt_dim, prompt_shape, key):
        assert len(prompt_shape) == 2, "prompt_shape must be a tuple of length 2"
        self.D = prompt_dim
        self.n_prefix, self.n_suffix = prompt_shape
        hid = prompt_dim // 16
        ks = jax.random.split(key, 12)

        std = 0.02
        self.prefix_prompt = std * jax.random.normal(ks[0], (self.n_prefix, prompt_dim), jnp.float32)
        self.suffix_prompt = std * jax.random.normal(ks[1], (self.n_suffix, prompt_dim), jnp.float32)

        # meta_net: Linear(1024, D//16) -> ReLU -> Linear(D//16, D)
        self.w1 = 0.01 * jax.random.normal(ks[2], (1024, hid), jnp.float32)
        self.b1 = 0.01 * jax.random.normal(ks[3], (1, hid), jnp.float32)
        self.w2 = 0.01 * jax.random.normal(ks[4], (hid, prompt_dim), jnp.float32)
        self.b2 = 0.01 * jax.random.normal(ks[5], (1, prompt_dim), jnp.float32)

        # buffers normally coming from clip_model.token_embedding("X.")
        self.start_signal = std * jax.random.normal(ks[6], (1, prompt_dim), jnp.float32)
        self.dot_signal = std * jax.random.normal(ks[7], (1, prompt_dim), jnp.float32)
        self.end_signal = std * jax.random.normal(ks[8], (1, prompt_dim), jnp.float32)
        self.pad_signal = std * jax.random.normal(ks[9], (1, prompt_dim), jnp.float32)

        # frozen CLIP text-side tensors used by get_text_feature
        self.positional_embedding = 0.01 * jax.random.normal(ks[10], (self.MAX_LEN, prompt_dim), jnp.float32)
        self.text_projection = 0.02 * jax.random.normal(ks[11], (prompt_dim, prompt_dim), jnp.float32)

        # kernel-side copies: lane-padded hidden dim + bf16 bulk operands
        hid_pad = _round_up(hid, 128)
        self.w1_kern = jnp.pad(self.w1, ((0, 0), (0, hid_pad - hid))).astype(jnp.bfloat16)
        self.b1_kern = jnp.pad(self.b1, ((0, 0), (0, hid_pad - hid)))            # f32
        self.w2_kern = jnp.pad(self.w2, ((0, hid_pad - hid), (0, 0))).astype(jnp.bfloat16)
        self.proj_kern = self.text_projection.astype(jnp.bfloat16)

        # host-side copies of the frozen buffers used to fold the EOT addend
        # (no runtime gather on the hot path); cached per noun_list
        self._end_np = np.asarray(self.end_signal)
        self._pos_np = np.asarray(self.positional_embedding)
        self._addend_cache = {}

        self.noun_bucket = {}

    def add_noun(self, name, emb):
        self.noun_bucket[name] = emb
        self._addend_cache.clear()

    def _get_addend(self, noun_key):
        addend = self._addend_cache.get(noun_key)
        if addend is None:
            n_prefix_rows = 1 + self.n_prefix                    # start_signal + prefix_prompt
            n_suffix_rows = self.n_suffix + 2                    # suffix_prompt + dot + end
            lengths = [n_prefix_rows + n_suffix_rows + self.noun_bucket[n].shape[0]
                       for n in noun_key]
            assert all(l <= self.MAX_LEN for l in lengths)
            idx = np.array([l - 1 for l in lengths], dtype=np.int32)
            # EOT row of each assembled prompt = end_signal (+ bias, in-kernel)
            # + positional_embedding[length-1]; fold the static part here so
            # the [B, CLS, 77, D] prompt assembly is never materialized.
            addend = jnp.asarray(self._end_np + self._pos_np[idx], dtype=jnp.float32)
            self._addend_cache[noun_key] = addend
        return addend

    # ---------------- Pallas fast path ----------------
    def forward(self, noun_list, features_nchw):
        # AvgPool2d((H, W)) as a single fused XLA reduce over the native NCHW
        # tensor: no transpose kernel, no bf16 cast pass, and only the tiny
        # [B, C] pooled result is fed to the Pallas kernel.
        pooled = jnp.mean(features_nchw, axis=(2, 3))            # [B, C] f32
        addend = self._get_addend(tuple(noun_list))              # [CLS, D] f32 (cached)
        return fused_text_features(pooled, self.w1_kern, self.b1_kern,
                                   self.w2_kern, self.b2, addend, self.proj_kern)

    # ---------------- pure-JAX reference (general path, f32) ----------------
    def _assemble(self, noun_list, prefix, suffix, B):
        P, S, D = prefix.shape[1], suffix.shape[1], self.D
        pad = jnp.broadcast_to(self.pad_signal[None], (B, 1, D))
        embs, lengths = [], []
        for noun in noun_list:
            noun_emb = self.noun_bucket[noun]                        # [n_tok, D]
            n_tok = noun_emb.shape[0]
            length = P + S + n_tok
            lengths.append(length)
            noun_b = jnp.broadcast_to(noun_emb[None], (B, n_tok, D))
            pad_rep = jnp.broadcast_to(pad, (B, self.MAX_LEN - length, D))
            embs.append(jnp.concatenate([prefix, noun_b, suffix, pad_rep], axis=1))
        embeddings = jnp.stack(embs, axis=0)                         # [cls, B, 77, D]
        embeddings = jnp.transpose(embeddings, (1, 0, 2, 3))         # [B, cls, 77, D]
        indices = jnp.array(lengths, dtype=jnp.int32) - 1
        return embeddings, indices

    def forward_reference(self, noun_list, features_nchw):
        pooled = jnp.mean(features_nchw, axis=(2, 3))                # [B, C]
        h = jnp.maximum(pooled @ self.w1 + self.b1, 0.0)
        bias = h @ self.w2 + self.b2                                 # [B, D]
        prefix_base = jnp.concatenate([self.start_signal, self.prefix_prompt], axis=0)
        suffix_base = jnp.concatenate([self.suffix_prompt, self.dot_signal, self.end_signal], axis=0)
        prefix = prefix_base[None] + bias[:, None, :]
        suffix = suffix_base[None] + bias[:, None, :]
        B = features_nchw.shape[0]
        embeddings, indices = self._assemble(noun_list, prefix, suffix, B)
        CLS = embeddings.shape[1]
        x = embeddings + self.positional_embedding[None, None]
        g = x[:, jnp.arange(CLS), indices, :]                        # [B, cls, D]
        tf = g @ self.text_projection
        return tf / jnp.linalg.norm(tf, axis=-1, keepdims=True)


if __name__ == "__main__":
    key = jax.random.PRNGKey(0)
    k_mod, k_feat, k_n1, k_n2, k_n3 = jax.random.split(key, 5)

    prompt_dim = 512
    prompt_shape = (2, 2)                     # (n_prefix, n_suffix)
    module = ConditionalLearnablePromptExtractorPallas(prompt_dim, prompt_shape, k_mod)

    # synthetic "noun_bucket" token embeddings (stand-in for clip token_embedding)
    module.add_noun("cat", 0.02 * jax.random.normal(k_n1, (1, prompt_dim), jnp.float32))
    module.add_noun("dog", 0.02 * jax.random.normal(k_n2, (2, prompt_dim), jnp.float32))
    module.add_noun("fire hydrant", 0.02 * jax.random.normal(k_n3, (3, prompt_dim), jnp.float32))
    noun_list = ["cat", "dog", "fire hydrant"]

    # image features, PyTorch NCHW: [B=2, C=1024, H=4, W=4]
    features = jax.random.normal(k_feat, (2, 1024, 4, 4), jnp.float32)

    out = module.forward(noun_list, features)
    out = jax.block_until_ready(out)

    ref = module.forward_reference(noun_list, features)
    assert out.shape == ref.shape == (2, len(noun_list), prompt_dim)
    # bf16 weights with f32 MXU accumulation (pooling itself is exact f32)
    err = float(jnp.max(jnp.abs(out - ref)))
    assert jnp.allclose(out, ref, rtol=3e-2, atol=3e-3), err

    print("KERNEL_OK")
</pallas_src>

<mosaic_0001>
module attributes {stable_mosaic.version = 11 : i64} {
  func.func @_fused_prompt_text_kernel(%arg0: memref<2x1024xf32, #tpu.memory_space<vmem>>, %arg1: memref<1024x128xbf16, #tpu.memory_space<vmem>>, %arg2: memref<1x128xf32, #tpu.memory_space<vmem>>, %arg3: memref<128x512xbf16, #tpu.memory_space<vmem>>, %arg4: memref<1x512xf32, #tpu.memory_space<vmem>>, %arg5: memref<3x512xf32, #tpu.memory_space<vmem>>, %arg6: memref<512x512xbf16, #tpu.memory_space<vmem>>, %arg7: memref<2x3x512xf32, #tpu.memory_space<vmem>>) attributes {dimension_semantics = [], scalar_prefetch = 0 : i64, scratch_operands = 0 : i64, tpu.core_type = #tpu.core_type<tc>} {
    %c0 = arith.constant 0 : index
    %c0_0 = arith.constant 0 : index
    %0 = vector.load %arg0[%c0, %c0_0] : memref<2x1024xf32, #tpu.memory_space<vmem>>, vector<2x1024xf32>
    %1 = arith.truncf %0 : vector<2x1024xf32> to vector<2x1024xbf16>
    %c0_1 = arith.constant 0 : index
    %c0_2 = arith.constant 0 : index
    %2 = vector.load %arg1[%c0_1, %c0_2] : memref<1024x128xbf16, #tpu.memory_space<vmem>>, vector<1024x128xbf16>
    %cst = arith.constant dense<0.000000e+00> : vector<2x128xf32>
    %3 = tpu.matmul %1, %2, %cst {dimension_numbers = #tpu.dot_dimension_numbers<[1], [0], [0], [1], [0, 0, 1, 1], [], []>} : vector<2x1024xbf16>, vector<1024x128xbf16>, vector<2x128xf32> -> vector<2x128xf32>
    %c0_3 = arith.constant 0 : index
    %c0_4 = arith.constant 0 : index
    %4 = vector.load %arg2[%c0_3, %c0_4] : memref<1x128xf32, #tpu.memory_space<vmem>>, vector<1x128xf32>
    %5 = vector.broadcast %4 : vector<1x128xf32> to vector<2x128xf32>
    %6 = arith.addf %3, %5 : vector<2x128xf32>
    %cst_5 = arith.constant 0.000000e+00 : f32
    %7 = vector.broadcast %cst_5 : f32 to vector<2x128xf32>
    %8 = arith.maximumf %6, %7 : vector<2x128xf32>
    %9 = arith.truncf %8 : vector<2x128xf32> to vector<2x128xbf16>
    %c0_6 = arith.constant 0 : index
    %c0_7 = arith.constant 0 : index
    %10 = vector.load %arg3[%c0_6, %c0_7] : memref<128x512xbf16, #tpu.memory_space<vmem>>, vector<128x512xbf16>
    %cst_8 = arith.constant dense<0.000000e+00> : vector<2x512xf32>
    %11 = tpu.matmul %9, %10, %cst_8 {dimension_numbers = #tpu.dot_dimension_numbers<[1], [0], [0], [1], [0, 0, 1, 1], [], []>} : vector<2x128xbf16>, vector<128x512xbf16>, vector<2x512xf32> -> vector<2x512xf32>
    %c0_9 = arith.constant 0 : index
    %c0_10 = arith.constant 0 : index
    %12 = vector.load %arg4[%c0_9, %c0_10] : memref<1x512xf32, #tpu.memory_space<vmem>>, vector<1x512xf32>
    %13 = vector.broadcast %12 : vector<1x512xf32> to vector<2x512xf32>
    %14 = arith.addf %11, %13 : vector<2x512xf32>
    %c0_11 = arith.constant 0 : index
    %c0_12 = arith.constant 0 : index
    %15 = vector.load %arg5[%c0_11, %c0_12] : memref<3x512xf32, #tpu.memory_space<vmem>>, vector<3x512xf32>
    %16 = arith.truncf %15 : vector<3x512xf32> to vector<3x512xbf16>
    %c0_13 = arith.constant 0 : index
    %c0_14 = arith.constant 0 : index
    %17 = vector.load %arg6[%c0_13, %c0_14] : memref<512x512xbf16, #tpu.memory_space<vmem>>, vector<512x512xbf16>
    %cst_15 = arith.constant dense<0.000000e+00> : vector<3x512xf32>
    %18 = tpu.matmul %16, %17, %cst_15 {dimension_numbers = #tpu.dot_dimension_numbers<[1], [0], [0], [1], [0, 0, 1, 1], [], []>} : vector<3x512xbf16>, vector<512x512xbf16>, vector<3x512xf32> -> vector<3x512xf32>
    %19 = arith.truncf %14 : vector<2x512xf32> to vector<2x512xbf16>
    %c0_16 = arith.constant 0 : index
    %c0_17 = arith.constant 0 : index
    %20 = vector.load %arg6[%c0_16, %c0_17] : memref<512x512xbf16, #tpu.memory_space<vmem>>, vector<512x512xbf16>
    %cst_18 = arith.constant dense<0.000000e+00> : vector<2x512xf32>
    %21 = tpu.matmul %19, %20, %cst_18 {dimension_numbers = #tpu.dot_dimension_numbers<[1], [0], [0], [1], [0, 0, 1, 1], [], []>} : vector<2x512xbf16>, vector<512x512xbf16>, vector<2x512xf32> -> vector<2x512xf32>
    %22 = vector.shape_cast %18 : vector<3x512xf32> to vector<1x3x512xf32>
    %23 = vector.shape_cast %21 : vector<2x512xf32> to vector<2x1x512xf32>
    %24 = vector.broadcast %22 : vector<1x3x512xf32> to vector<2x3x512xf32>
    %25 = vector.broadcast %23 : vector<2x1x512xf32> to vector<2x3x512xf32>
    %26 = arith.addf %24, %25 : vector<2x3x512xf32>
    %27 = arith.mulf %26, %26 : vector<2x3x512xf32>
    %cst_19 = arith.constant dense<0.000000e+00> : vector<2x3xf32>
    %28 = vector.multi_reduction <add>, %27, %cst_19 [2] : vector<2x3x512xf32> to vector<2x3xf32>
    %29 = vector.shape_cast %28 : vector<2x3xf32> to vector<2x3x1xf32>
    %30 = math.rsqrt %29 : vector<2x3x1xf32>
    %31 = vector.broadcast %30 : vector<2x3x1xf32> to vector<2x3x512xf32>
    %32 = arith.mulf %26, %31 : vector<2x3x512xf32>
    %c0_20 = arith.constant 0 : index
    %c0_21 = arith.constant 0 : index
    %c0_22 = arith.constant 0 : index
    %33 = vector.load %arg7[%c0_20, %c0_21, %c0_22] : memref<2x3x512xf32, #tpu.memory_space<vmem>>, vector<2x3x512xf32>
    tpu.vector_store %arg7[%c0_20, %c0_21, %c0_22], %32 {strides = array<i32>} : memref<2x3x512xf32, #tpu.memory_space<vmem>>, vector<2x3x512xf32>,
    return
  }
}

</mosaic_0001>

<bundles_post_ra>
// kernel: tpu_custom_call.1
= control target key start
LH: loop header
LB: loop body
LE: loop exit
PB: predicated region body
PF: predicated region fallthrough
CT: control target
= control target key end

     0   :  { %12 = vsyncpa [#allocation3], 0  ;;  %s3854_s0 = inlined_call_operand.hbm [shape: f32[2,1024], index: 0, kind: input, shape index: {}]   ;;  %s3855_s1 = inlined_call_operand.hbm [shape: bf16[1024,128], index: 1, kind: input, shape index: {}]   ;;  %s3856_s2 = inlined_call_operand.vmem [shape: f32[1,128], index: 2, kind: input, shape index: {}]   ;;  %s3857_s3 = inlined_call_operand.hbm [shape: bf16[128,512], index: 3, kind: input, shape index: {}]   ;;  %s3858_s4 = inlined_call_operand.hbm [shape: f32[1,512], index: 4, kind: input, shape index: {}]   ;;  %s3859_s5 = inlined_call_operand.vmem [shape: f32[3,512], index: 5, kind: input, shape index: {}]   ;;  %s3860_s6 = inlined_call_operand.hbm [shape: bf16[512,512], index: 6, kind: input, shape index: {}]   ;;  %s3861_s7 = inlined_call_operand.vmem [shape: f32[2,3,512], index: 7, kind: output, shape index: {}]  }
   0x1   :  { %13 = vsyncpa [#allocation5], 0 }
   0x2   :  { %14 = vsyncpa [#allocation8], 0  ;;  %s3151_s24 = smov [#allocation4]   ;;  %s3035_s28 = scalar_lea.hbm %s3855_s1, 8192 }
   0x3   :  { %s30_s25 = sshll.u32 %s3151_s24, 4  ;;  %p3036_p0 = scmp.ne.s32.totalorder %s3855_s1, %s3035_s28  ;;  %s31_s25 = int_to_ptr.vmem [resolvable:$true] %s30_s25 }
   0x4   :  { %p3039_p1 = scmp.lt.u32.totalorder %s3035_s28, %s3855_s1 }
   0x6   :  { %p3041_p2 = pnand %p3039_p1, %p3036_p0 }
   0x8   :  { %3044 = shalt.err (!%p3041_p2)
}
   0x9   :  { %s3045_s10 = scalar_lea.vmem %s31_s25, 8192  ;;  %p3050_p4 = scmp.lt.s32.totalorder %s31_s25, %s31_s25 }
   0xa   :  { %p3046_p3 = scmp.ne.s32.totalorder %s31_s25, %s3045_s10  ;;  %p3051_p5 = scmp.lt.s32.totalorder %s3045_s10, %s3045_s10 }
   0xc   :  { %p3052_p6 = por %p3051_p5, %p3050_p4 }
   0xe   :  { %p3053_p7 = pnand %p3052_p6, %p3046_p3 }
  0x10   :  { %3056 = shalt.err (!%p3053_p7)
}
  0x11   :  { %s3152_s11 = smov 64   ;;  %s3153_s12 = smov 4  }
  0x12   :  { %36 = dma.hbm_to_vmem [thread:$0]  %s3855_s1, 8192, %s31_s25, [#allocation5], %s3152_s11, %s3152_s11, %s3153_s12  }
  0x13   :  { %s3154_s15 = smov [#allocation7]   ;;  %s3155_s17 = smov [#allocation2]  }
  0x14   :  { %s57_s16 = sshll.u32 %s3154_s15, 4  ;;  %s21_s18 = sshll.u32 %s3155_s17, 4  ;;  %s58_s16 = int_to_ptr.vmem [resolvable:$true] %s57_s16  ;;  %s22_s18 = int_to_ptr.vmem [resolvable:$true] %s21_s18 }
  0x15   :  { %s3057_s21 = scalar_lea.hbm %s3858_s4, 64 }
  0x16   :  { %p3058_p8 = scmp.ne.s32.totalorder %s3858_s4, %s3057_s21  ;;  %p3061_p9 = scmp.lt.u32.totalorder %s3057_s21, %s3858_s4 }
  0x18   :  { %p3063_p10 = pnand %p3061_p9, %p3058_p8 }
  0x1a   :  { %3066 = shalt.err (!%p3063_p10)
}
  0x1b   :  { %s3067_s1 = scalar_lea.vmem %s58_s16, 64  ;;  %p3072_p12 = scmp.lt.s32.totalorder %s58_s16, %s58_s16 }
  0x1c   :  { %p3068_p11 = scmp.ne.s32.totalorder %s58_s16, %s3067_s1  ;;  %p3073_p13 = scmp.lt.s32.totalorder %s3067_s1, %s3067_s1 }
  0x1e   :  { %p3074_p0 = por %p3073_p13, %p3072_p12 }
  0x20   :  { %p3075_p1 = pnand %p3074_p0, %p3068_p11 }
  0x22   :  { %3078 = shalt.err (!%p3075_p1)
}
  0x23   :  { %60 = dma.hbm_to_vmem [thread:$0]  %s3858_s4, 64, %s58_s16, [#allocation8]  }
  0x24   :  { %s3079_s30 = scalar_lea.hbm %s3854_s0, 256 }
  0x25   :  { %p3080_p2 = scmp.ne.s32.totalorder %s3854_s0, %s3079_s30  ;;  %p3083_p3 = scmp.lt.u32.totalorder %s3079_s30, %s3854_s0 }
  0x27   :  { %p3085_p4 = pnand %p3083_p3, %p3080_p2 }
  0x29   :  { %3088 = shalt.err (!%p3085_p4)
}
  0x2a   :  { %s3089_s12 = scalar_lea.vmem %s22_s18, 256  ;;  %p3094_p6 = scmp.lt.s32.totalorder %s22_s18, %s22_s18 }
  0x2b   :  { %p3090_p5 = scmp.ne.s32.totalorder %s22_s18, %s3089_s12  ;;  %p3095_p7 = scmp.lt.s32.totalorder %s3089_s12, %s3089_s12 }
  0x2d   :  { %p3096_p8 = por %p3095_p7, %p3094_p6 }
  0x2f   :  { %p3097_p9 = pnand %p3096_p8, %p3090_p5 }
  0x31   :  { %3100 = shalt.err (!%p3097_p9)
}
  0x32   :  { %24 = dma.hbm_to_vmem [thread:$0]  %s3854_s0, 256, %s22_s18, [#allocation3]  }
  0x33   :  { %s3156_s14 = smov [#allocation6]   ;;  %s3101_s19 = scalar_lea.hbm %s3857_s3, 4096 }
  0x34   :  { %s44_s15 = sshll.u32 %s3156_s14, 4  ;;  %p3102_p10 = scmp.ne.s32.totalorder %s3857_s3, %s3101_s19  ;;  %s45_s15 = int_to_ptr.vmem [resolvable:$true] %s44_s15 }
  0x35   :  { %p3105_p11 = scmp.lt.u32.totalorder %s3101_s19, %s3857_s3 }
  0x37   :  { %p3107_p12 = pnand %p3105_p11, %p3102_p10 }
  0x39   :  { %3110 = shalt.err (!%p3107_p12)
}
  0x3a   :  { %s3111_s24 = scalar_lea.vmem %s45_s15, 4096  ;;  %p3116_p0 = scmp.lt.s32.totalorder %s45_s15, %s45_s15 }
  0x3b   :  { %p3112_p13 = scmp.ne.s32.totalorder %s45_s15, %s3111_s24  ;;  %p3117_p1 = scmp.lt.s32.totalorder %s3111_s24, %s3111_s24 }
  0x3d   :  { %p3118_p2 = por %p3117_p1, %p3116_p0 }
  0x3f   :  { %p3119_p3 = pnand %p3118_p2, %p3112_p13 }
  0x41   :  { %3122 = shalt.err (!%p3119_p3)
}
  0x42   :  { %s3157_s0 = smov 256   ;;  %s3158_s18 = smov 16  }
  0x43   :  { %50 = dma.hbm_to_vmem [thread:$0]  %s3857_s3, 4096, %s45_s15, [#allocation5], %s3157_s0, %s3157_s0, %s3158_s18  }
  0x44   :  { %s3159_s25 = smov [#allocation9]   ;;  %s3123_s30 = scalar_lea.hbm %s3860_s6, 16384 }
  0x45   :  { %s68_s27 = sshll.u32 %s3159_s25, 4  ;;  %p3124_p4 = scmp.ne.s32.totalorder %s3860_s6, %s3123_s30  ;;  %s69_s27 = int_to_ptr.vmem [resolvable:$true] %s68_s27 }
  0x46   :  { %p3127_p5 = scmp.lt.u32.totalorder %s3123_s30, %s3860_s6 }
  0x48   :  { %p3129_p6 = pnand %p3127_p5, %p3124_p4 }
  0x4a   :  { %3132 = shalt.err (!%p3129_p6)
}
  0x4b   :  { %s3133_s12 = scalar_lea.vmem %s69_s27, 16384  ;;  %p3138_p8 = scmp.lt.s32.totalorder %s69_s27, %s69_s27 }
  0x4c   :  { %p3134_p7 = scmp.ne.s32.totalorder %s69_s27, %s3133_s12  ;;  %p3139_p9 = scmp.lt.s32.totalorder %s3133_s12, %s3133_s12 }
  0x4e   :  { %p3140_p10 = por %p3139_p9, %p3138_p8 }
  0x50   :  { %p3141_p11 = pnand %p3140_p10, %p3134_p7 }
  0x52   :  { %3144 = shalt.err (!%p3141_p11)
}
  0x53   :  { %74 = dma.hbm_to_vmem [thread:$0]  %s3860_s6, 16384, %s69_s27, [#allocation8], %s3157_s0, %s3157_s0, %s3158_s18  }
  0x54   :  { %3145 = dma.done.wait [#allocation3], 256  }
  0x55   :  { %3146 = vsyncadd [#allocation3], 4294967040 }
  0x56   :  { %3147 = dma.done.wait [#allocation5], 12288  }
  0x57   :  { %3148 = vsyncadd [#allocation5], 4294955008 }
  0x58   :  { %3149 = dma.done.wait [#allocation8], 16448  }
  0x59   :  { %3150 = vsyncadd [#allocation8], 4294950848  ;;  %v2723_v0 = vld [vmem:[#allocation4 + $0x40] sm:$0xff]   ;;  %v2727_v4 = vld [vmem:[#allocation4 + $0x48] sm:$0xff]   ;;  %v3160_v22 = vmov 1983009808   ;;  %v99_v24 = vlaneseq }
  0x5a   :  { %v2724_v1 = vld [vmem:[#allocation4 + $0xc0] sm:$0xff]   ;;  %2607 = vmatprep.subr.bf16.mxu0 %v2723_v0  ;;  %v2728_v5 = vld [vmem:[#allocation4 + $0xc8] sm:$0xff]   ;;  %v2731_v8 = vld [vmem:[#allocation4 + $0x50] sm:$0xff]   ;;  %v97_v23 = vunpack.c.l.s4 %v3160_v22  ;;  %vm2326_vm0 = vcmask 1042432  }
  0x5b   :  { %v2725_v2 = vld [vmem:[#allocation4] sm:$0xff]   ;;  %2629 = vmatprep.subr.bf16.mxu1 %v2724_v1  ;;  %v2729_v6 = vld [vmem:[#allocation4 + $0x8] sm:$0xff]   ;;  %v2732_v9 = vld [vmem:[#allocation4 + $0xd0] sm:$0xff]   ;;  %v3263_v30 = vshrl.u32 %v99_v24, 7 }
  0x5c   :  { %v2726_v3 = vld [vmem:[#allocation4 + $0x80] sm:$0xff]   ;;  %2608 = vmatpush3.bf16.msra.mxu0 %v2725_v2  ;;  %v2730_v7 = vld [vmem:[#allocation4 + $0x88] sm:$0xff]   ;;  %v2733_v10 = vld [vmem:[#allocation4 + $0x10] sm:$0xff]   ;;  %v98_v29 = vunpack.c.0.s8 %v97_v23 }
  0x5d   :  { %2630 = vmatpush3.bf16.msra.mxu1 %v2726_v3  ;;  %2609 = vmatprep.subr.bf16.mxu0 %v2727_v4  ;;  %v2734_v11 = vld [vmem:[#allocation4 + $0x90] sm:$0xff]   ;;  %v2735_v12 = vld [vmem:[#allocation4 + $0x58] sm:$0xff]   ;;  %v2739_v16 = vld [vmem:[#allocation4 + $0x60] sm:$0xff]   ;;  %3930 = vst [vmem:[#allocation13_spill] sm:$0xff] %v3263_v30 }
  0x5e   :  { %2631 = vmatprep.subr.bf16.mxu1 %v2728_v5  ;;  %v2736_v13 = vld [vmem:[#allocation4 + $0xd8] sm:$0xff]   ;;  %v2740_v17 = vld [vmem:[#allocation4 + $0xe0] sm:$0xff]   ;;  %v2743_v20 = vld [vmem:[#allocation4 + $0x68] sm:$0xff]   ;;  %v3266_v35 = vsub.s32 %v98_v29, %v3263_v30 }
  0x5f   :  { %v2737_v14 = vld [vmem:[#allocation4 + $0x18] sm:$0xff]   ;;  %v2741_v18 = vld [vmem:[#allocation4 + $0x20] sm:$0xff]   ;;  %v2744_v21 = vld [vmem:[#allocation4 + $0xe8] sm:$0xff]  }
  0x60   :  { %2610 = vmatpush3.bf16.msra.mxu0 %v2729_v6  ;;  %v2738_v15 = vld [vmem:[#allocation4 + $0x98] sm:$0xff]   ;;  %v2742_v19 = vld [vmem:[#allocation4 + $0xa0] sm:$0xff]   ;;  %v2745_v25 = vld [vmem:[#allocation4 + $0x28] sm:$0xff]  }
  0x61   :  { %2632 = vmatpush3.bf16.msra.mxu1 %v2730_v7  ;;  %2611 = vmatprep.subr.bf16.mxu0 %v2731_v8  ;;  %v2746_v26 = vld [vmem:[#allocation4 + $0xa8] sm:$0xff]   ;;  %v2747_v27 = vld [vmem:[#allocation4 + $0x70] sm:$0xff]   ;;  %v2751_v33 = vld [vmem:[#allocation4 + $0x78] sm:$0xff]  }
  0x62   :  { %2633 = vmatprep.subr.bf16.mxu1 %v2732_v9  ;;  %v2748_v28 = vld [vmem:[#allocation4 + $0xf0] sm:$0xff]   ;;  %v2752_v34 = vld [vmem:[#allocation4 + $0xf8] sm:$0xff]   ;;  %v2756_v41 = vld [vmem:[#allocation4 + $0x140] sm:$0xff]  }
  0x63   :  { %v2749_v31 = vld [vmem:[#allocation4 + $0x30] sm:$0xff]   ;;  %v2753_v36 = vld [vmem:[#allocation4 + $0x38] sm:$0xff]   ;;  %v2757_v42 = vld [vmem:[#allocation4 + $0x1c0] sm:$0xff]  }
  0x64   :  { %2612 = vmatpush3.bf16.msra.mxu0 %v2733_v10  ;;  %v2750_v32 = vld [vmem:[#allocation4 + $0xb0] sm:$0xff]   ;;  %v2754_v37 = vld [vmem:[#allocation4 + $0xb8] sm:$0xff]   ;;  %v2758_v46 = vld [vmem:[#allocation4 + $0x100] sm:$0xff]  }
  0x65   :  { %2634 = vmatpush3.bf16.msra.mxu1 %v2734_v11  ;;  %2613 = vmatprep.subr.bf16.mxu0 %v2735_v12  ;;  %v91_v38 = vld [vmem:[#allocation2] sm:$0xff]  ;;  %v2759_v49 = vld [vmem:[#allocation4 + $0x180] sm:$0xff]   ;;  %v2760_v51 = vld [vmem:[#allocation4 + $0x148] sm:$0xff]  }
  0x66   :  { %2635 = vmatprep.subr.bf16.mxu1 %v2736_v13  ;;  %v102_v39 = vrot.slane %v91_v38, %v3266_v35  ;;  %v95_v40 = vcombine.high %v91_v38, %v91_v38  ;;  %v2761_v53 = vld [vmem:[#allocation4 + $0x1c8] sm:$0xff]   ;;  %v2764_v56 = vld [vmem:[#allocation4 + $0x150] sm:$0xff]   ;;  %v2768_v60 = vld [vmem:[#allocation4 + $0x158] sm:$0xff]  }
  0x67   :  { %v2762_v54 = vld [vmem:[#allocation4 + $0x108] sm:$0xff]   ;;  %v2765_v57 = vld [vmem:[#allocation4 + $0x1d0] sm:$0xff]   ;;  %v2769_v61 = vld [vmem:[#allocation4 + $0x1d8] sm:$0xff]  }
  0x68   :  { %2614 = vmatpush3.bf16.msra.mxu0 %v2737_v14  ;;  %v110_v43 = vcombine.high %v102_v39, %v102_v39  ;;  %v109_v44 = vrot.slane %v95_v40, %v3266_v35  ;;  %v137_v45 = vpack.c.bf16 %v102_v39, %v102_v39  ;;  %v2763_v55 = vld [vmem:[#allocation4 + $0x188] sm:$0xff]   ;;  %v2766_v58 = vld [vmem:[#allocation4 + $0x110] sm:$0xff]   ;;  %v2770_v62 = vld [vmem:[#allocation4 + $0x118] sm:$0xff]  }
  0x69   :  { %2636 = vmatpush3.bf16.msra.mxu1 %v2738_v15  ;;  %2615 = vmatprep.subr.bf16.mxu0 %v2739_v16  ;;  %v2767_v59 = vld [vmem:[#allocation4 + $0x190] sm:$0xff]   ;;  %v2771_v63 = vld [vmem:[#allocation4 + $0x198] sm:$0xff]   ;;  %v2772_v0 = vld [vmem:[#allocation4 + $0x160] sm:$0xff]  }
  0x6a   :  { %2637 = vmatprep.subr.bf16.mxu1 %v2740_v17  ;;  %v138_v47 = vpack.c.bf16 %v110_v43, %v110_v43  ;;  %v111_v48 = vcombine.high %v109_v44, %v109_v44  ;;  %v139_v50 = vpack.c.bf16 %v109_v44, %v109_v44  ;;  %v2773_v1 = vld [vmem:[#allocation4 + $0x1e0] sm:$0xff]   ;;  %v2776_v4 = vld [vmem:[#allocation4 + $0x168] sm:$0xff]   ;;  %v2780_v8 = vld [vmem:[#allocation4 + $0x170] sm:$0xff]  }
  0x6b   :  { %v2774_v2 = vld [vmem:[#allocation4 + $0x120] sm:$0xff]   ;;  %v2777_v5 = vld [vmem:[#allocation4 + $0x1e8] sm:$0xff]   ;;  %v2781_v9 = vld [vmem:[#allocation4 + $0x1f0] sm:$0xff]  }
  0x6c   :  { %2616 = vmatpush3.bf16.msra.mxu0 %v2741_v18  ;;  %696 = vmatprep.mubr.bf16.mxu0 %v138_v47  ;;  %v140_v52 = vpack.c.bf16 %v111_v48, %v111_v48  ;;  %v2775_v3 = vld [vmem:[#allocation4 + $0x1a0] sm:$0xff]   ;;  %v2778_v6 = vld [vmem:[#allocation4 + $0x128] sm:$0xff]   ;;  %v2782_v10 = vld [vmem:[#allocation4 + $0x130] sm:$0xff]  }
  0x6d   :  { %2638 = vmatpush3.bf16.msra.mxu1 %v2742_v19  ;;  %2617 = vmatprep.subr.bf16.mxu0 %v2743_v20  ;;  %v2779_v7 = vld [vmem:[#allocation4 + $0x1a8] sm:$0xff]   ;;  %v2783_v11 = vld [vmem:[#allocation4 + $0x1b0] sm:$0xff]   ;;  %v2784_v12 = vld [vmem:[#allocation4 + $0x178] sm:$0xff]  }
  0x6e   :  { %2639 = vmatprep.subr.bf16.mxu1 %v2744_v21  ;;  %736 = vmatprep.mubr.bf16.mxu1 %v140_v52  ;;  %v2785_v13 = vld [vmem:[#allocation4 + $0x1f8] sm:$0xff]   ;;  %v2809_v39 = vld [vmem:[#allocation6 + $0x64] ss:$16 sps:$4 sm:$0xff]  }
  0x6f   :  { %v2786_v14 = vld [vmem:[#allocation4 + $0x138] sm:$0xff]   ;;  %v2815_v43 = vld [vmem:[#allocation6 + $0x84] ss:$16 sps:$4 sm:$0xff]  }
  0x70   :  { %2618 = vmatpush3.bf16.msra.mxu0 %v2745_v25  ;;  %v92_v15 = vld [vmem:[#allocation2 + $0x8] sm:$0xff]  ;;  %v2821_v47 = vld [vmem:[#allocation6 + $0xa4] ss:$16 sps:$4 sm:$0xff]  }
  0x71   :  { %2640 = vmatpush3.bf16.msra.mxu1 %v2746_v26  ;;  %2619 = vmatprep.subr.bf16.mxu0 %v2747_v27  ;;  %v2787_v16 = vld [vmem:[#allocation4 + $0x1b8] sm:$0xff]   ;;  %v119_v17 = vrot.slane %v92_v15, %v3266_v35  ;;  %v112_v18 = vcombine.high %v92_v15, %v92_v15  ;;  %v2789_v26 = vld [vmem:[#allocation6] ss:$16 sps:$4 sm:$0xff]   ;;  %v2791_v27 = vld [vmem:[#allocation6 + $0x4] ss:$16 sps:$4 sm:$0xff]  }
  0x72   :  { %2641 = vmatprep.subr.bf16.mxu1 %v2748_v28  ;;  %v2792_v28 = vld [vmem:[#allocation6 + $0x8] ss:$16 sps:$4 sm:$0xff]   ;;  %v2794_v29 = vld [vmem:[#allocation6 + $0xc] ss:$16 sps:$4 sm:$0xff]  }
  0x73   :  { %v127_v19 = vcombine.high %v119_v17, %v119_v17  ;;  %v126_v20 = vrot.slane %v112_v18, %v3266_v35  ;;  %v141_v21 = vpack.c.bf16 %v119_v17, %v119_v17  ;;  %v2803_v35 = vld [vmem:[#allocation6 + $0x44] ss:$16 sps:$4 sm:$0xff]   ;;  %v2804_v38 = vld [vmem:[#allocation6 + $0x48] ss:$16 sps:$4 sm:$0xff]   ;;  %v2812_v40 = vld [vmem:[#allocation6 + $0x6c] ss:$16 sps:$4 sm:$0xff]  }
  0x74   :  { %2620 = vmatpush3.bf16.msra.mxu0 %v2749_v31  ;;  %v2797_v31 = vld [vmem:[#allocation6 + $0x24] ss:$16 sps:$4 sm:$0xff]   ;;  %v2818_v44 = vld [vmem:[#allocation6 + $0x8c] ss:$16 sps:$4 sm:$0xff]  }
  0x75   :  { %2642 = vmatpush3.bf16.msra.mxu1 %v2750_v32  ;;  %2621 = vmatprep.subr.bf16.mxu0 %v2751_v33  ;;  %v142_v22 = vpack.c.bf16 %v127_v19, %v127_v19  ;;  %v128_v23 = vcombine.high %v126_v20, %v126_v20  ;;  %v143_v24 = vpack.c.bf16 %v126_v20, %v126_v20  ;;  %v2800_v32 = vld [vmem:[#allocation6 + $0x2c] ss:$16 sps:$4 sm:$0xff]   ;;  %v2795_v33 = vld [vmem:[#allocation6 + $0x20] ss:$16 sps:$4 sm:$0xff]  }
  0x76   :  { %2643 = vmatprep.subr.bf16.mxu1 %v2752_v34  ;;  %v2798_v34 = vld [vmem:[#allocation6 + $0x28] ss:$16 sps:$4 sm:$0xff]   ;;  %v2824_v48 = vld [vmem:[#allocation6 + $0xac] ss:$16 sps:$4 sm:$0xff]  }
  0x77   :  { %v144_v25 = vpack.c.bf16 %v128_v23, %v128_v23  ;;  %v2830_v52 = vld [vmem:[#allocation6 + $0xcc] ss:$16 sps:$4 sm:$0xff]  }
  0x78   :  { %2622 = vmatpush3.bf16.msra.mxu0 %v2753_v36  ;;  %v2806_v36 = vld [vmem:[#allocation6 + $0x4c] ss:$16 sps:$4 sm:$0xff]  }
  0x79   :  { %2644 = vmatpush3.bf16.msra.mxu1 %v2754_v37  ;;  %2651 = vmatprep.subr.bf16.mxu0 %v2756_v41  ;;  %v2801_v37 = vld [vmem:[#allocation6 + $0x40] ss:$16 sps:$4 sm:$0xff]   ;;  %v3467_v30 = vld [vmem:[%s3859_s5 + $0x8] sm:$0x77] }
  0x7a   :  { %2673 = vmatprep.subr.bf16.mxu1 %v2757_v42  ;;  %v2807_v41 = vld [vmem:[#allocation6 + $0x60] ss:$16 sps:$4 sm:$0xff]   ;;  %v2810_v42 = vld [vmem:[#allocation6 + $0x68] ss:$16 sps:$4 sm:$0xff]  }
  0x7b   :  { %697 = vmatmul.mubr.bf16.vlgmr.msra.gmra.mrb[0].mxu0 %v137_v45  ;;  %v2813_v45 = vld [vmem:[#allocation6 + $0x80] ss:$16 sps:$4 sm:$0xff]  }
  0x7c   :  { %2652 = vmatpush3.bf16.msra.mxu0 %v2758_v46  ;;  %737 = vmatmul.mubr.bf16.vlgmr.msra.gmra.mrb[0].mxu1 %v139_v50  ;;  %v2816_v46 = vld [vmem:[#allocation6 + $0x88] ss:$16 sps:$4 sm:$0xff]  }
  0x7d   :  { %2653 = vmatprep.subr.bf16.mxu0 %v2760_v51  ;;  %2674 = vmatpush3.bf16.msra.mxu1 %v2759_v49  ;;  %v2819_v49 = vld [vmem:[#allocation6 + $0xa0] ss:$16 sps:$4 sm:$0xff]   ;;  %v2822_v50 = vld [vmem:[#allocation6 + $0xa8] ss:$16 sps:$4 sm:$0xff]   ;;  %v2827_v51 = vld [vmem:[#allocation6 + $0xc4] ss:$16 sps:$4 sm:$0xff]  }
  0x7e   :  { %2675 = vmatprep.subr.bf16.mxu1 %v2761_v53  ;;  %776 = vmatprep.mubr.bf16.mxu0 %v142_v22  ;;  %v2825_v53 = vld [vmem:[#allocation6 + $0xc0] ss:$16 sps:$4 sm:$0xff]  }
  0x7f   :  { %816 = vmatprep.mubr.bf16.mxu1 %v144_v25 }
  0x80   :  { %2654 = vmatpush3.bf16.msra.mxu0 %v2762_v54  ;;  %v2828_v54 = vld [vmem:[#allocation6 + $0xc8] ss:$16 sps:$4 sm:$0xff]  }
  0x81   :  { %2655 = vmatprep.subr.bf16.mxu0 %v2764_v56  ;;  %2676 = vmatpush3.bf16.msra.mxu1 %v2763_v55  ;;  %v2833_v55 = vld [vmem:[#allocation6 + $0xe4] ss:$16 sps:$4 sm:$0xff]   ;;  %v2836_v56 = vld [vmem:[#allocation6 + $0xec] ss:$16 sps:$4 sm:$0xff]  }
  0x82   :  { %2677 = vmatprep.subr.bf16.mxu1 %v2765_v57  ;;  %v2831_v57 = vld [vmem:[#allocation6 + $0xe0] ss:$16 sps:$4 sm:$0xff]  }
  0x84   :  { %2656 = vmatpush3.bf16.msra.mxu0 %v2766_v58  ;;  %v2834_v58 = vld [vmem:[#allocation6 + $0xe8] ss:$16 sps:$4 sm:$0xff]  }
  0x85   :  { %2657 = vmatprep.subr.bf16.mxu0 %v2768_v60  ;;  %2678 = vmatpush3.bf16.msra.mxu1 %v2767_v59  ;;  %v3272_v59 = vld [vmem:[#allocation9 + $0x4] ss:$16 sps:$4 sm:$0xff]   ;;  %v3161_v60 = vmov 0  }
  0x86   :  { %2679 = vmatprep.subr.bf16.mxu1 %v2769_v61  ;;  %v3274_v61 = vld [vmem:[#allocation9 + $0xc] ss:$16 sps:$4 sm:$0xff]  }
  0x88   :  { %2658 = vmatpush3.bf16.msra.mxu0 %v2770_v62 }
  0x89   :  { %2659 = vmatprep.subr.bf16.mxu0 %v2772_v0  ;;  %2680 = vmatpush3.bf16.msra.mxu1 %v2771_v63  ;;  %v2382_v63 = vld [vmem:[%s3856_s2] ss:$0 sm:$0xff] }
  0x8a   :  { %2681 = vmatprep.subr.bf16.mxu1 %v2773_v1 }
  0x8c   :  { %2660 = vmatpush3.bf16.msra.mxu0 %v2774_v2 }
  0x8d   :  { %2661 = vmatprep.subr.bf16.mxu0 %v2776_v4  ;;  %2682 = vmatpush3.bf16.msra.mxu1 %v2775_v3 }
  0x8e   :  { %2683 = vmatprep.subr.bf16.mxu1 %v2777_v5 }
  0x90   :  { %2662 = vmatpush3.bf16.msra.mxu0 %v2778_v6 }
  0x91   :  { %2663 = vmatprep.subr.bf16.mxu0 %v2780_v8  ;;  %2684 = vmatpush3.bf16.msra.mxu1 %v2779_v7 }
  0x92   :  { %2685 = vmatprep.subr.bf16.mxu1 %v2781_v9 }
  0x94   :  { %2664 = vmatpush3.bf16.msra.mxu0 %v2782_v10 }
  0x95   :  { %2665 = vmatprep.subr.bf16.mxu0 %v2784_v12  ;;  %2686 = vmatpush3.bf16.msra.mxu1 %v2783_v11 }
  0x96   :  { %2687 = vmatprep.subr.bf16.mxu1 %v2785_v13 }
  0x98   :  { %2666 = vmatpush3.bf16.msra.mxu0 %v2786_v14 }
  0x99   :  { %2688 = vmatpush3.bf16.msra.mxu1 %v2787_v16  ;;  %1040 = vmatprep.subr.bf16.mxu0 %v2791_v27  ;;  %v3290_v27 = vld [vmem:[#allocation9 + $0x8] ss:$16 sps:$4 sm:$0xff]  }
  0x9a   :  { %1081 = vmatprep.subr.bf16.mxu1 %v2794_v29  ;;  %v3292_v29 = vld [vmem:[#allocation9 + $0x24] ss:$16 sps:$4 sm:$0xff]  }
  0x9b   :  { %777 = vmatmul.mubr.bf16.vlgmr.msra.gmra.mrb[4].mxu0 %v141_v21  ;;  %v3284_v21 = vld [vmem:[%s3859_s5] sm:$0x77] }
  0x9c   :  { %817 = vmatmul.mubr.bf16.vlgmr.msra.gmra.mrb[4].mxu1 %v143_v24  ;;  %1041 = vmatpush1.bf16.msra.mxu0 %v2789_v26  ;;  %v1126_v24 = vcombine.high %v3284_v21, %v3284_v21  ;;  %v3288_v26 = vld [vmem:[#allocation9] ss:$16 sps:$4 sm:$0xff]  }
  0x9d   :  { %1082 = vmatpush1.bf16.msra.mxu1 %v2792_v28  ;;  %1042 = vmatprep.subr.bf16.mxu0 %v2797_v31  ;;  %v3294_v31 = vld [vmem:[#allocation9 + $0x2c] ss:$16 sps:$4 sm:$0xff]  }
  0x9e   :  { %1083 = vmatprep.subr.bf16.mxu1 %v2800_v32  ;;  %1072 = vmatprep.mubr.bf16.mxu0 %v3161_v60  ;;  %v1131_v32 = vpack.c.bf16 %v1126_v24, %v1126_v24  ;;  %v3454_v24 = vld [vmem:[#allocation9 + $0x1c0] ss:$16 sps:$4 sm:$0xff]  }
  0x9f   :  { %1113 = vmatprep.mubr.bf16.mxu1 %v3161_v60  ;;  %v3376_v60 = vld [vmem:[#allocation9 + $0x104] ss:$16 sps:$4 sm:$0xff]   ;;  %3938 = vst [vmem:[#allocation21_spill] sm:$0xff] %v3454_v24 }
  0xa0   :  { %1043 = vmatpush1.bf16.msra.mxu0 %v2795_v33  ;;  %v3298_v33 = vld [vmem:[#allocation9 + $0x20] ss:$16 sps:$4 sm:$0xff]  }
  0xa1   :  { %1084 = vmatpush1.bf16.msra.mxu1 %v2798_v34  ;;  %1044 = vmatprep.subr.bf16.mxu0 %v2803_v35  ;;  %v3300_v34 = vld [vmem:[#allocation9 + $0x28] ss:$16 sps:$4 sm:$0xff]   ;;  %v3304_v35 = vld [vmem:[#allocation9 + $0x44] ss:$16 sps:$4 sm:$0xff]  }
  0xa2   :  { %1085 = vmatprep.subr.bf16.mxu1 %v2806_v36  ;;  %v3306_v36 = vld [vmem:[#allocation9 + $0x4c] ss:$16 sps:$4 sm:$0xff]  }
  0xa4   :  { %1045 = vmatpush1.bf16.msra.mxu0 %v2801_v37  ;;  %v3310_v37 = vld [vmem:[#allocation9 + $0x40] ss:$16 sps:$4 sm:$0xff]  }
  0xa5   :  { %1086 = vmatpush1.bf16.msra.mxu1 %v2804_v38  ;;  %1046 = vmatprep.subr.bf16.mxu0 %v2809_v39  ;;  %v3312_v38 = vld [vmem:[#allocation9 + $0x48] ss:$16 sps:$4 sm:$0xff]   ;;  %v3316_v39 = vld [vmem:[#allocation9 + $0x64] ss:$16 sps:$4 sm:$0xff]  }
  0xa6   :  { %1087 = vmatprep.subr.bf16.mxu1 %v2812_v40  ;;  %v3318_v40 = vld [vmem:[#allocation9 + $0x6c] ss:$16 sps:$4 sm:$0xff]  }
  0xa8   :  { %1047 = vmatpush1.bf16.msra.mxu0 %v2807_v41  ;;  %v3322_v41 = vld [vmem:[#allocation9 + $0x60] ss:$16 sps:$4 sm:$0xff]  }
  0xa9   :  { %1088 = vmatpush1.bf16.msra.mxu1 %v2810_v42  ;;  %1048 = vmatprep.subr.bf16.mxu0 %v2815_v43  ;;  %v3324_v42 = vld [vmem:[#allocation9 + $0x68] ss:$16 sps:$4 sm:$0xff]   ;;  %v3328_v43 = vld [vmem:[#allocation9 + $0x84] ss:$16 sps:$4 sm:$0xff]  }
  0xaa   :  { %1089 = vmatprep.subr.bf16.mxu1 %v2818_v44  ;;  %v3330_v44 = vld [vmem:[#allocation9 + $0x8c] ss:$16 sps:$4 sm:$0xff]  }
  0xac   :  { %1049 = vmatpush1.bf16.msra.mxu0 %v2813_v45  ;;  %v3334_v45 = vld [vmem:[#allocation9 + $0x80] ss:$16 sps:$4 sm:$0xff]  }
  0xad   :  { %1090 = vmatpush1.bf16.msra.mxu1 %v2816_v46  ;;  %1050 = vmatprep.subr.bf16.mxu0 %v2821_v47  ;;  %v3336_v46 = vld [vmem:[#allocation9 + $0x88] ss:$16 sps:$4 sm:$0xff]   ;;  %v3340_v47 = vld [vmem:[#allocation9 + $0xa4] ss:$16 sps:$4 sm:$0xff]  }
  0xae   :  { %1091 = vmatprep.subr.bf16.mxu1 %v2824_v48  ;;  %v3342_v48 = vld [vmem:[#allocation9 + $0xac] ss:$16 sps:$4 sm:$0xff]  }
  0xb0   :  { %1051 = vmatpush1.bf16.msra.mxu0 %v2819_v49  ;;  %v3346_v49 = vld [vmem:[#allocation9 + $0xa0] ss:$16 sps:$4 sm:$0xff]  }
  0xb1   :  { %1092 = vmatpush1.bf16.msra.mxu1 %v2822_v50  ;;  %1052 = vmatprep.subr.bf16.mxu0 %v2827_v51  ;;  %v3348_v50 = vld [vmem:[#allocation9 + $0xa8] ss:$16 sps:$4 sm:$0xff]   ;;  %v3352_v51 = vld [vmem:[#allocation9 + $0xc4] ss:$16 sps:$4 sm:$0xff]  }
  0xb2   :  { %1093 = vmatprep.subr.bf16.mxu1 %v2830_v52  ;;  %v3354_v52 = vld [vmem:[#allocation9 + $0xcc] ss:$16 sps:$4 sm:$0xff]  }
  0xb4   :  { %1053 = vmatpush1.bf16.msra.mxu0 %v2825_v53  ;;  %v3358_v53 = vld [vmem:[#allocation9 + $0xc0] ss:$16 sps:$4 sm:$0xff]  }
  0xb5   :  { %1094 = vmatpush1.bf16.msra.mxu1 %v2828_v54  ;;  %1054 = vmatprep.subr.bf16.mxu0 %v2833_v55  ;;  %v3360_v54 = vld [vmem:[#allocation9 + $0xc8] ss:$16 sps:$4 sm:$0xff]   ;;  %v3364_v55 = vld [vmem:[#allocation9 + $0xe4] ss:$16 sps:$4 sm:$0xff]  }
  0xb6   :  { %1095 = vmatprep.subr.bf16.mxu1 %v2836_v56  ;;  %v3366_v56 = vld [vmem:[#allocation9 + $0xec] ss:$16 sps:$4 sm:$0xff]  }
  0xb8   :  { %1055 = vmatpush1.bf16.msra.mxu0 %v2831_v57  ;;  %v3370_v57 = vld [vmem:[#allocation9 + $0xe0] ss:$16 sps:$4 sm:$0xff]  }
  0xb9   :  { %1096 = vmatpush1.bf16.msra.mxu1 %v2834_v58  ;;  %1902 = vmatprep.subr.bf16.mxu0 %v3272_v59  ;;  %v3372_v58 = vld [vmem:[#allocation9 + $0xe8] ss:$16 sps:$4 sm:$0xff]  }
  0xba   :  { %1984 = vmatprep.subr.bf16.mxu1 %v3274_v61 }
 0x14e   :  { %v2623_v62 = vpop.f32.mrb[0].mxu0 }
 0x14f   :  { %v2624_v0 = vpop.f32.mrb[1].mxu0  ;;  %v2645_v1 = vpop.f32.mrb[0].mxu1 }
 0x150   :  { %v2625_v2 = vadd.f32 %v2624_v0, %v2623_v62  ;;  %v2626_v3 = vpop.f32.mrb[2].mxu0  ;;  %v2646_v4 = vpop.f32.mrb[1].mxu1  ;;  %v3378_v62 = vld [vmem:[#allocation9 + $0x10c] ss:$16 sps:$4 sm:$0xff]   ;;  %v3384_v0 = vld [vmem:[#allocation9 + $0x108] ss:$16 sps:$4 sm:$0xff]  }
 0x151   :  { %v2627_v5 = vpop.f32.mrb[3].mxu0  ;;  %v2647_v7 = vadd.f32 %v2646_v4, %v2645_v1  ;;  %v2648_v8 = vpop.f32.mrb[2].mxu1  ;;  %v3388_v1 = vld [vmem:[#allocation9 + $0x124] ss:$16 sps:$4 sm:$0xff]   ;;  %v3394_v3 = vld [vmem:[#allocation9 + $0x120] ss:$16 sps:$4 sm:$0xff]  }
 0x152   :  { %v699_v6 = vadd.f32 %v2625_v2, %v2382_v63  ;;  %v2649_v9 = vpop.f32.mrb[3].mxu1  ;;  %v3382_v63 = vld [vmem:[#allocation9 + $0x100] ss:$16 sps:$4 sm:$0xff]   ;;  %v3390_v2 = vld [vmem:[#allocation9 + $0x12c] ss:$16 sps:$4 sm:$0xff]  }
 0x153   :  { %v3396_v4 = vld [vmem:[#allocation9 + $0x128] ss:$16 sps:$4 sm:$0xff]   ;;  %v3400_v5 = vld [vmem:[#allocation9 + $0x144] ss:$16 sps:$4 sm:$0xff]  }
 0x154   :  { %v739_v10 = vadd.f32 %v2647_v7, %v699_v6  ;;  %v3402_v6 = vld [vmem:[#allocation9 + $0x14c] ss:$16 sps:$4 sm:$0xff]   ;;  %v3406_v7 = vld [vmem:[#allocation9 + $0x140] ss:$16 sps:$4 sm:$0xff]   ;;  %v3408_v8 = vld [vmem:[#allocation9 + $0x148] ss:$16 sps:$4 sm:$0xff]  }
 0x155   :  { %v3412_v9 = vld [vmem:[#allocation9 + $0x164] ss:$16 sps:$4 sm:$0xff]  }
 0x16e   :  { %v2667_v11 = vpop.f32.mrb[4].mxu0 }
 0x16f   :  { %v2668_v12 = vpop.f32.mrb[5].mxu0  ;;  %v2689_v13 = vpop.f32.mrb[4].mxu1 }
 0x170   :  { %v2669_v14 = vadd.f32 %v2668_v12, %v2667_v11  ;;  %v2670_v15 = vpop.f32.mrb[6].mxu0  ;;  %v2690_v16 = vpop.f32.mrb[5].mxu1  ;;  %v3418_v11 = vld [vmem:[#allocation9 + $0x160] ss:$16 sps:$4 sm:$0xff]   ;;  %v3420_v12 = vld [vmem:[#allocation9 + $0x168] ss:$16 sps:$4 sm:$0xff]  }
 0x171   :  { %v2671_v17 = vpop.f32.mrb[7].mxu0  ;;  %v2691_v19 = vadd.f32 %v2690_v16, %v2689_v13  ;;  %v2692_v20 = vpop.f32.mrb[6].mxu1  ;;  %v3424_v13 = vld [vmem:[#allocation9 + $0x184] ss:$16 sps:$4 sm:$0xff]   ;;  %v3430_v15 = vld [vmem:[#allocation9 + $0x180] ss:$16 sps:$4 sm:$0xff]  }
 0x172   :  { %v779_v18 = vadd.f32 %v2669_v14, %v739_v10  ;;  %v2693_v22 = vpop.f32.mrb[7].mxu1  ;;  %v3414_v10 = vld [vmem:[#allocation9 + $0x16c] ss:$16 sps:$4 sm:$0xff]   ;;  %v3432_v16 = vld [vmem:[#allocation9 + $0x188] ss:$16 sps:$4 sm:$0xff]  }
 0x173   :  { %v3426_v14 = vld [vmem:[#allocation9 + $0x18c] ss:$16 sps:$4 sm:$0xff]   ;;  %3931 = vst [vmem:[#allocation14_spill] sm:$0xff] %v3432_v16  ;;  %v3436_v17 = vld [vmem:[#allocation9 + $0x1a4] ss:$16 sps:$4 sm:$0xff]  }
 0x174   :  { %v819_v23 = vadd.f32 %v2691_v19, %v779_v18  ;;  %3932 = vst [vmem:[#allocation15_spill] sm:$0xff] %v3436_v17  ;;  %v3438_v18 = vld [vmem:[#allocation9 + $0x1ac] ss:$16 sps:$4 sm:$0xff]   ;;  %v3442_v19 = vld [vmem:[#allocation9 + $0x1a0] ss:$16 sps:$4 sm:$0xff]  }
 0x175   :  { %3933 = vst [vmem:[#allocation16_spill] sm:$0xff] %v3438_v18  ;;  %3934 = vst [vmem:[#allocation17_spill] sm:$0xff] %v3442_v19  ;;  %v3444_v20 = vld [vmem:[#allocation9 + $0x1a8] ss:$16 sps:$4 sm:$0xff]   ;;  %v3448_v22 = vld [vmem:[#allocation9 + $0x1c4] ss:$16 sps:$4 sm:$0xff]  }
 0x176   :  { %v824_v25 = vmax.f32 %v819_v23, 0.0  ;;  %3935 = vst [vmem:[#allocation18_spill] sm:$0xff] %v3444_v20  ;;  %3936 = vst [vmem:[#allocation19_spill] sm:$0xff] %v3448_v22  ;;  %v3450_v23 = vld [vmem:[#allocation9 + $0x1cc] ss:$16 sps:$4 sm:$0xff]  }
 0x177   :  { %3937 = vst [vmem:[#allocation20_spill] sm:$0xff] %v3450_v23 }
 0x178   :  { %v825_v28 = vpack.c.bf16 %v824_v25, %v824_v25  ;;  %v3456_v25 = vld [vmem:[#allocation9 + $0x1c8] ss:$16 sps:$4 sm:$0xff]  }
 0x179   :  { %3939 = vst [vmem:[#allocation22_spill] sm:$0xff] %v3456_v25 }
 0x17a   :  { %1073 = vmatmul.mubr.bf16.vlgmr.msra.gmra.mrb[8].mxu0 %v825_v28  ;;  %1114 = vmatmul.mubr.bf16.vlgmr.msra.gmra.mrb[8].mxu1 %v825_v28  ;;  %v3460_v28 = vld [vmem:[#allocation9 + $0x1e4] ss:$16 sps:$4 sm:$0xff]  }
 0x17b   :  { %1903 = vmatpush1.bf16.msra.mxu0 %v3288_v26  ;;  %1985 = vmatpush1.bf16.msra.mxu1 %v3290_v27  ;;  %3940 = vst [vmem:[#allocation23_spill] sm:$0xff] %v3460_v28 }
 0x17c   :  { %1904 = vmatprep.subr.bf16.mxu0 %v3292_v29  ;;  %1986 = vmatprep.subr.bf16.mxu1 %v3294_v31 }
 0x17d   :  { %1934 = vmatprep.mubr.bf16.mxu0 %v1131_v32  ;;  %2016 = vmatprep.mubr.bf16.mxu1 %v1131_v32  ;;  %v3462_v32 = vld [vmem:[#allocation9 + $0x1ec] ss:$16 sps:$4 sm:$0xff]  }
 0x17e   :  { %3941 = vst [vmem:[#allocation24_spill] sm:$0xff] %v3462_v32 }
 0x17f   :  { %1905 = vmatpush1.bf16.msra.mxu0 %v3298_v33  ;;  %1987 = vmatpush1.bf16.msra.mxu1 %v3300_v34 }
 0x180   :  { %1906 = vmatprep.subr.bf16.mxu0 %v3304_v35  ;;  %1988 = vmatprep.subr.bf16.mxu1 %v3306_v36 }
 0x183   :  { %1907 = vmatpush1.bf16.msra.mxu0 %v3310_v37  ;;  %1989 = vmatpush1.bf16.msra.mxu1 %v3312_v38 }
 0x184   :  { %1908 = vmatprep.subr.bf16.mxu0 %v3316_v39  ;;  %1990 = vmatprep.subr.bf16.mxu1 %v3318_v40 }
 0x187   :  { %1909 = vmatpush1.bf16.msra.mxu0 %v3322_v41  ;;  %1991 = vmatpush1.bf16.msra.mxu1 %v3324_v42 }
 0x188   :  { %1910 = vmatprep.subr.bf16.mxu0 %v3328_v43  ;;  %1992 = vmatprep.subr.bf16.mxu1 %v3330_v44 }
 0x18b   :  { %1911 = vmatpush1.bf16.msra.mxu0 %v3334_v45  ;;  %1993 = vmatpush1.bf16.msra.mxu1 %v3336_v46 }
 0x18c   :  { %1912 = vmatprep.subr.bf16.mxu0 %v3340_v47  ;;  %1994 = vmatprep.subr.bf16.mxu1 %v3342_v48 }
 0x18f   :  { %1913 = vmatpush1.bf16.msra.mxu0 %v3346_v49  ;;  %1995 = vmatpush1.bf16.msra.mxu1 %v3348_v50 }
 0x190   :  { %1914 = vmatprep.subr.bf16.mxu0 %v3352_v51  ;;  %1996 = vmatprep.subr.bf16.mxu1 %v3354_v52 }
 0x193   :  { %1915 = vmatpush1.bf16.msra.mxu0 %v3358_v53  ;;  %1997 = vmatpush1.bf16.msra.mxu1 %v3360_v54 }
 0x194   :  { %1916 = vmatprep.subr.bf16.mxu0 %v3364_v55  ;;  %1998 = vmatprep.subr.bf16.mxu1 %v3366_v56 }
 0x197   :  { %1917 = vmatpush1.bf16.msra.mxu0 %v3370_v57  ;;  %1999 = vmatpush1.bf16.msra.mxu1 %v3372_v58 }
 0x198   :  { %1918 = vmatprep.subr.bf16.mxu0 %v3376_v60  ;;  %2000 = vmatprep.subr.bf16.mxu1 %v3378_v62 }
 0x19b   :  { %1919 = vmatpush1.bf16.msra.mxu0 %v3382_v63  ;;  %2001 = vmatpush1.bf16.msra.mxu1 %v3384_v0 }
 0x19c   :  { %1920 = vmatprep.subr.bf16.mxu0 %v3388_v1  ;;  %2002 = vmatprep.subr.bf16.mxu1 %v3390_v2 }
 0x19f   :  { %1921 = vmatpush1.bf16.msra.mxu0 %v3394_v3  ;;  %2003 = vmatpush1.bf16.msra.mxu1 %v3396_v4 }
 0x1a0   :  { %1922 = vmatprep.subr.bf16.mxu0 %v3400_v5  ;;  %2004 = vmatprep.subr.bf16.mxu1 %v3402_v6 }
 0x1a3   :  { %1923 = vmatpush1.bf16.msra.mxu0 %v3406_v7  ;;  %2005 = vmatpush1.bf16.msra.mxu1 %v3408_v8 }
 0x1a4   :  { %1924 = vmatprep.subr.bf16.mxu0 %v3412_v9  ;;  %2006 = vmatprep.subr.bf16.mxu1 %v3414_v10 }
 0x1a7   :  { %1925 = vmatpush1.bf16.msra.mxu0 %v3418_v11  ;;  %2007 = vmatpush1.bf16.msra.mxu1 %v3420_v12 }
 0x1a8   :  { %1926 = vmatprep.subr.bf16.mxu0 %v3424_v13  ;;  %2008 = vmatprep.subr.bf16.mxu1 %v3426_v14 }
 0x1ab   :  { %1927 = vmatpush1.bf16.msra.mxu0 %v3430_v15  ;;  %2009 = vmatpush1.bf16.msra.mxu1 %v3432_v16 }
 0x1ac   :  { %1928 = vmatprep.subr.bf16.mxu0 %v3436_v17  ;;  %2010 = vmatprep.subr.bf16.mxu1 %v3438_v18  ;;  %v1127_v18 = vcombine.high %v3467_v30, %v3467_v30  ;;  %v3489_v17 = vld [vmem:[#allocation9 + $0x208] ss:$16 sps:$4 sm:$0xff]  }
 0x1ae   :  { %v1133_v16 = vpack.c.bf16 %v1127_v18, %v1127_v18  ;;  %v3511_v18 = vld [vmem:[#allocation9 + $0x240] ss:$16 sps:$4 sm:$0xff]  }
 0x1af   :  { %1929 = vmatpush1.bf16.msra.mxu0 %v3442_v19  ;;  %2011 = vmatpush1.bf16.msra.mxu1 %v3444_v20  ;;  %v3471_v20 = vld [vmem:[#allocation9 + $0x1e0] ss:$16 sps:$4 sm:$0xff]   ;;  %v3473_v19 = vld [vmem:[#allocation9 + $0x1e8] ss:$16 sps:$4 sm:$0xff]   ;;  %3951 = vst [vmem:[#allocation34_spill] sm:$0xff] %v3511_v18 }
 0x1b0   :  { %1930 = vmatprep.subr.bf16.mxu0 %v3448_v22  ;;  %2012 = vmatprep.subr.bf16.mxu1 %v3450_v23  ;;  %3942 = vst [vmem:[#allocation25_spill] sm:$0xff] %v3473_v19  ;;  %v3477_v23 = vld [vmem:[#allocation9 + $0x204] ss:$16 sps:$4 sm:$0xff]   ;;  %v3479_v22 = vld [vmem:[#allocation9 + $0x20c] ss:$16 sps:$4 sm:$0xff]  }
 0x1b1   :  { %3943 = vst [vmem:[#allocation26_spill] sm:$0xff] %v3477_v23  ;;  %3944 = vst [vmem:[#allocation27_spill] sm:$0xff] %v3479_v22 }
 0x1b3   :  { %1931 = vmatpush1.bf16.msra.mxu0 %v3454_v24  ;;  %2013 = vmatpush1.bf16.msra.mxu1 %v3456_v25  ;;  %v1130_v24 = vpack.c.bf16 %v3284_v21, %v3284_v21  ;;  %v3487_v25 = vld [vmem:[#allocation9 + $0x200] ss:$16 sps:$4 sm:$0xff]  }
 0x1b4   :  { %1932 = vmatprep.subr.bf16.mxu0 %v3460_v28  ;;  %2014 = vmatprep.subr.bf16.mxu1 %v3462_v32  ;;  %v3493_v32 = vld [vmem:[#allocation9 + $0x224] ss:$16 sps:$4 sm:$0xff]   ;;  %v3495_v28 = vld [vmem:[#allocation9 + $0x22c] ss:$16 sps:$4 sm:$0xff]   ;;  %v3499_v21 = vld [vmem:[#allocation9 + $0x220] ss:$16 sps:$4 sm:$0xff]  }
 0x1b5   :  { %3945 = vst [vmem:[#allocation28_spill] sm:$0xff] %v3493_v32  ;;  %3946 = vst [vmem:[#allocation29_spill] sm:$0xff] %v3495_v28 }
 0x1b6   :  { %3947 = vst [vmem:[#allocation30_spill] sm:$0xff] %v3499_v21 }
 0x1b7   :  { %1933 = vmatpush1.bf16.msra.mxu0 %v3471_v20  ;;  %2015 = vmatpush1.bf16.msra.mxu1 %v3473_v19  ;;  %v3501_v19 = vld [vmem:[#allocation9 + $0x228] ss:$16 sps:$4 sm:$0xff]  }
 0x1b8   :  { %1943 = vmatprep.subr.bf16.mxu0 %v3477_v23  ;;  %2025 = vmatprep.subr.bf16.mxu1 %v3479_v22  ;;  %3948 = vst [vmem:[#allocation31_spill] sm:$0xff] %v3501_v19  ;;  %v3505_v22 = vld [vmem:[#allocation9 + $0x244] ss:$16 sps:$4 sm:$0xff]   ;;  %v3507_v23 = vld [vmem:[#allocation9 + $0x24c] ss:$16 sps:$4 sm:$0xff]  }
 0x1b9   :  { %3949 = vst [vmem:[#allocation32_spill] sm:$0xff] %v3505_v22  ;;  %3950 = vst [vmem:[#allocation33_spill] sm:$0xff] %v3507_v23 }
 0x1ba   :  { %1935 = vmatmul.mubr.bf16.vlgmr.msra.gmra.mrb[12].mxu0 %v1130_v24  ;;  %2017 = vmatmul.mubr.bf16.vlgmr.msra.gmra.mrb[12].mxu1 %v1130_v24  ;;  %v3513_v24 = vld [vmem:[#allocation9 + $0x248] ss:$16 sps:$4 sm:$0xff]  }
 0x1bb   :  { %1944 = vmatpush1.bf16.msra.mxu0 %v3487_v25  ;;  %2026 = vmatpush1.bf16.msra.mxu1 %v3489_v17  ;;  %3952 = vst [vmem:[#allocation35_spill] sm:$0xff] %v3513_v24 }
 0x1bc   :  { %1945 = vmatprep.subr.bf16.mxu0 %v3493_v32  ;;  %2027 = vmatprep.subr.bf16.mxu1 %v3495_v28  ;;  %v3517_v32 = vld [vmem:[#allocation9 + $0x264] ss:$16 sps:$4 sm:$0xff]   ;;  %v3519_v28 = vld [vmem:[#allocation9 + $0x26c] ss:$16 sps:$4 sm:$0xff]  }
 0x1bd   :  { %1975 = vmatprep.mubr.bf16.mxu0 %v1133_v16  ;;  %2057 = vmatprep.mubr.bf16.mxu1 %v1133_v16  ;;  %3953 = vst [vmem:[#allocation36_spill] sm:$0xff] %v3517_v32  ;;  %3954 = vst [vmem:[#allocation37_spill] sm:$0xff] %v3519_v28  ;;  %v3523_v16 = vld [vmem:[#allocation9 + $0x260] ss:$16 sps:$4 sm:$0xff]  }
 0x1be   :  { %3955 = vst [vmem:[#allocation38_spill] sm:$0xff] %v3523_v16 }
 0x1bf   :  { %1946 = vmatpush1.bf16.msra.mxu0 %v3499_v21  ;;  %2028 = vmatpush1.bf16.msra.mxu1 %v3501_v19  ;;  %v3525_v21 = vld [vmem:[#allocation9 + $0x268] ss:$16 sps:$4 sm:$0xff]   ;;  %v3529_v19 = vld [vmem:[#allocation9 + $0x284] ss:$16 sps:$4 sm:$0xff]  }
 0x1c0   :  { %1947 = vmatprep.subr.bf16.mxu0 %v3505_v22  ;;  %2029 = vmatprep.subr.bf16.mxu1 %v3507_v23  ;;  %3956 = vst [vmem:[#allocation39_spill] sm:$0xff] %v3525_v21  ;;  %3957 = vst [vmem:[#allocation40_spill] sm:$0xff] %v3529_v19  ;;  %v3531_v22 = vld [vmem:[#allocation9 + $0x28c] ss:$16 sps:$4 sm:$0xff]   ;;  %v3535_v23 = vld [vmem:[#allocation9 + $0x280] ss:$16 sps:$4 sm:$0xff]  }
 0x1c1   :  { %3958 = vst [vmem:[#allocation41_spill] sm:$0xff] %v3531_v22  ;;  %3959 = vst [vmem:[#allocation42_spill] sm:$0xff] %v3535_v23 }
 0x1c3   :  { %1948 = vmatpush1.bf16.msra.mxu0 %v3511_v18  ;;  %2030 = vmatpush1.bf16.msra.mxu1 %v3513_v24  ;;  %v3537_v18 = vld [vmem:[#allocation9 + $0x288] ss:$16 sps:$4 sm:$0xff]   ;;  %v3541_v24 = vld [vmem:[#allocation9 + $0x2a4] ss:$16 sps:$4 sm:$0xff]  }
 0x1c4   :  { %1949 = vmatprep.subr.bf16.mxu0 %v3517_v32  ;;  %2031 = vmatprep.subr.bf16.mxu1 %v3519_v28  ;;  %3960 = vst [vmem:[#allocation43_spill] sm:$0xff] %v3537_v18  ;;  %3961 = vst [vmem:[#allocation44_spill] sm:$0xff] %v3541_v24  ;;  %v3543_v32 = vld [vmem:[#allocation9 + $0x2ac] ss:$16 sps:$4 sm:$0xff]   ;;  %v3547_v28 = vld [vmem:[#allocation9 + $0x2a0] ss:$16 sps:$4 sm:$0xff]  }
 0x1c5   :  { %3962 = vst [vmem:[#allocation45_spill] sm:$0xff] %v3543_v32  ;;  %3963 = vst [vmem:[#allocation46_spill] sm:$0xff] %v3547_v28 }
 0x1c7   :  { %1950 = vmatpush1.bf16.msra.mxu0 %v3523_v16  ;;  %2032 = vmatpush1.bf16.msra.mxu1 %v3525_v21  ;;  %v3549_v16 = vld [vmem:[#allocation9 + $0x2a8] ss:$16 sps:$4 sm:$0xff]   ;;  %v3553_v21 = vld [vmem:[#allocation9 + $0x2c4] ss:$16 sps:$4 sm:$0xff]  }
 0x1c8   :  { %1951 = vmatprep.subr.bf16.mxu0 %v3529_v19  ;;  %2033 = vmatprep.subr.bf16.mxu1 %v3531_v22  ;;  %3964 = vst [vmem:[#allocation47_spill] sm:$0xff] %v3549_v16  ;;  %3965 = vst [vmem:[#allocation48_spill] sm:$0xff] %v3553_v21  ;;  %v3555_v19 = vld [vmem:[#allocation9 + $0x2cc] ss:$16 sps:$4 sm:$0xff]   ;;  %v3559_v22 = vld [vmem:[#allocation9 + $0x2c0] ss:$16 sps:$4 sm:$0xff]  }
 0x1c9   :  { %3966 = vst [vmem:[#allocation49_spill] sm:$0xff] %v3555_v19  ;;  %3967 = vst [vmem:[#allocation50_spill] sm:$0xff] %v3559_v22 }
 0x1cb   :  { %1952 = vmatpush1.bf16.msra.mxu0 %v3535_v23  ;;  %2034 = vmatpush1.bf16.msra.mxu1 %v3537_v18  ;;  %v3561_v23 = vld [vmem:[#allocation9 + $0x2c8] ss:$16 sps:$4 sm:$0xff]   ;;  %v3565_v18 = vld [vmem:[#allocation9 + $0x2e4] ss:$16 sps:$4 sm:$0xff]  }
 0x1cc   :  { %1953 = vmatprep.subr.bf16.mxu0 %v3541_v24  ;;  %2035 = vmatprep.subr.bf16.mxu1 %v3543_v32  ;;  %3968 = vst [vmem:[#allocation51_spill] sm:$0xff] %v3561_v23  ;;  %3969 = vst [vmem:[#allocation52_spill] sm:$0xff] %v3565_v18  ;;  %v3567_v24 = vld [vmem:[#allocation9 + $0x2ec] ss:$16 sps:$4 sm:$0xff]   ;;  %v3571_v32 = vld [vmem:[#allocation9 + $0x2e0] ss:$16 sps:$4 sm:$0xff]  }
 0x1cd   :  { %3970 = vst [vmem:[#allocation53_spill] sm:$0xff] %v3567_v24  ;;  %3971 = vst [vmem:[#allocation54_spill] sm:$0xff] %v3571_v32 }
 0x1cf   :  { %1954 = vmatpush1.bf16.msra.mxu0 %v3547_v28  ;;  %2036 = vmatpush1.bf16.msra.mxu1 %v3549_v16  ;;  %v3573_v28 = vld [vmem:[#allocation9 + $0x2e8] ss:$16 sps:$4 sm:$0xff]   ;;  %v3577_v16 = vld [vmem:[#allocation9 + $0x304] ss:$16 sps:$4 sm:$0xff]  }
 0x1d0   :  { %1955 = vmatprep.subr.bf16.mxu0 %v3553_v21  ;;  %2037 = vmatprep.subr.bf16.mxu1 %v3555_v19  ;;  %3972 = vst [vmem:[#allocation55_spill] sm:$0xff] %v3573_v28  ;;  %3973 = vst [vmem:[#allocation56_spill] sm:$0xff] %v3577_v16  ;;  %v3579_v21 = vld [vmem:[#allocation9 + $0x30c] ss:$16 sps:$4 sm:$0xff]   ;;  %v3583_v19 = vld [vmem:[#allocation9 + $0x300] ss:$16 sps:$4 sm:$0xff]  }
 0x1d1   :  { %3974 = vst [vmem:[#allocation57_spill] sm:$0xff] %v3579_v21  ;;  %3975 = vst [vmem:[#allocation58_spill] sm:$0xff] %v3583_v19 }
 0x1d3   :  { %1956 = vmatpush1.bf16.msra.mxu0 %v3559_v22  ;;  %2038 = vmatpush1.bf16.msra.mxu1 %v3561_v23  ;;  %v3585_v22 = vld [vmem:[#allocation9 + $0x308] ss:$16 sps:$4 sm:$0xff]   ;;  %v3589_v23 = vld [vmem:[#allocation9 + $0x324] ss:$16 sps:$4 sm:$0xff]  }
 0x1d4   :  { %1957 = vmatprep.subr.bf16.mxu0 %v3565_v18  ;;  %2039 = vmatprep.subr.bf16.mxu1 %v3567_v24  ;;  %3976 = vst [vmem:[#allocation59_spill] sm:$0xff] %v3585_v22  ;;  %3977 = vst [vmem:[#allocation60_spill] sm:$0xff] %v3589_v23  ;;  %v3591_v18 = vld [vmem:[#allocation9 + $0x32c] ss:$16 sps:$4 sm:$0xff]   ;;  %v3595_v24 = vld [vmem:[#allocation9 + $0x320] ss:$16 sps:$4 sm:$0xff]  }
 0x1d5   :  { %3978 = vst [vmem:[#allocation61_spill] sm:$0xff] %v3591_v18  ;;  %3979 = vst [vmem:[#allocation62_spill] sm:$0xff] %v3595_v24 }
 0x1d7   :  { %1958 = vmatpush1.bf16.msra.mxu0 %v3571_v32  ;;  %2040 = vmatpush1.bf16.msra.mxu1 %v3573_v28  ;;  %v3597_v32 = vld [vmem:[#allocation9 + $0x328] ss:$16 sps:$4 sm:$0xff]   ;;  %v3601_v28 = vld [vmem:[#allocation9 + $0x344] ss:$16 sps:$4 sm:$0xff]  }
 0x1d8   :  { %1959 = vmatprep.subr.bf16.mxu0 %v3577_v16  ;;  %2041 = vmatprep.subr.bf16.mxu1 %v3579_v21  ;;  %3980 = vst [vmem:[#allocation63_spill] sm:$0xff] %v3597_v32  ;;  %3981 = vst [vmem:[#allocation64_spill] sm:$0xff] %v3601_v28  ;;  %v3603_v16 = vld [vmem:[#allocation9 + $0x34c] ss:$16 sps:$4 sm:$0xff]   ;;  %v3607_v21 = vld [vmem:[#allocation9 + $0x340] ss:$16 sps:$4 sm:$0xff]  }
 0x1d9   :  { %3982 = vst [vmem:[#allocation65_spill] sm:$0xff] %v3603_v16  ;;  %3983 = vst [vmem:[#allocation66_spill] sm:$0xff] %v3607_v21 }
 0x1db   :  { %1960 = vmatpush1.bf16.msra.mxu0 %v3583_v19  ;;  %2042 = vmatpush1.bf16.msra.mxu1 %v3585_v22  ;;  %v3609_v19 = vld [vmem:[#allocation9 + $0x348] ss:$16 sps:$4 sm:$0xff]   ;;  %v3613_v22 = vld [vmem:[#allocation9 + $0x364] ss:$16 sps:$4 sm:$0xff]  }
 0x1dc   :  { %1961 = vmatprep.subr.bf16.mxu0 %v3589_v23  ;;  %2043 = vmatprep.subr.bf16.mxu1 %v3591_v18  ;;  %3984 = vst [vmem:[#allocation67_spill] sm:$0xff] %v3609_v19  ;;  %3985 = vst [vmem:[#allocation68_spill] sm:$0xff] %v3613_v22  ;;  %v3615_v23 = vld [vmem:[#allocation9 + $0x36c] ss:$16 sps:$4 sm:$0xff]   ;;  %v3619_v18 = vld [vmem:[#allocation9 + $0x360] ss:$16 sps:$4 sm:$0xff]  }
 0x1dd   :  { %3986 = vst [vmem:[#allocation69_spill] sm:$0xff] %v3615_v23  ;;  %3987 = vst [vmem:[#allocation70_spill] sm:$0xff] %v3619_v18 }
 0x1df   :  { %1962 = vmatpush1.bf16.msra.mxu0 %v3595_v24  ;;  %2044 = vmatpush1.bf16.msra.mxu1 %v3597_v32  ;;  %v3621_v24 = vld [vmem:[#allocation9 + $0x368] ss:$16 sps:$4 sm:$0xff]   ;;  %v3625_v32 = vld [vmem:[#allocation9 + $0x384] ss:$16 sps:$4 sm:$0xff]  }
 0x1e0   :  { %1963 = vmatprep.subr.bf16.mxu0 %v3601_v28  ;;  %2045 = vmatprep.subr.bf16.mxu1 %v3603_v16  ;;  %3988 = vst [vmem:[#allocation71_spill] sm:$0xff] %v3621_v24  ;;  %3989 = vst [vmem:[#allocation72_spill] sm:$0xff] %v3625_v32  ;;  %v3627_v28 = vld [vmem:[#allocation9 + $0x38c] ss:$16 sps:$4 sm:$0xff]   ;;  %v3631_v16 = vld [vmem:[#allocation9 + $0x380] ss:$16 sps:$4 sm:$0xff]  }
 0x1e1   :  { %3990 = vst [vmem:[#allocation73_spill] sm:$0xff] %v3627_v28  ;;  %3991 = vst [vmem:[#allocation74_spill] sm:$0xff] %v3631_v16 }
 0x1e3   :  { %1964 = vmatpush1.bf16.msra.mxu0 %v3607_v21  ;;  %2046 = vmatpush1.bf16.msra.mxu1 %v3609_v19  ;;  %v3633_v21 = vld [vmem:[#allocation9 + $0x388] ss:$16 sps:$4 sm:$0xff]   ;;  %v3637_v19 = vld [vmem:[#allocation9 + $0x3a4] ss:$16 sps:$4 sm:$0xff]  }
 0x1e4   :  { %1965 = vmatprep.subr.bf16.mxu0 %v3613_v22  ;;  %2047 = vmatprep.subr.bf16.mxu1 %v3615_v23  ;;  %3992 = vst [vmem:[#allocation75_spill] sm:$0xff] %v3633_v21  ;;  %3993 = vst [vmem:[#allocation76_spill] sm:$0xff] %v3637_v19  ;;  %v3639_v22 = vld [vmem:[#allocation9 + $0x3ac] ss:$16 sps:$4 sm:$0xff]   ;;  %v3643_v23 = vld [vmem:[#allocation9 + $0x3a0] ss:$16 sps:$4 sm:$0xff]  }
 0x1e5   :  { %3994 = vst [vmem:[#allocation77_spill] sm:$0xff] %v3639_v22  ;;  %3995 = vst [vmem:[#allocation78_spill] sm:$0xff] %v3643_v23 }
 0x1e7   :  { %1966 = vmatpush1.bf16.msra.mxu0 %v3619_v18  ;;  %2048 = vmatpush1.bf16.msra.mxu1 %v3621_v24  ;;  %v3645_v18 = vld [vmem:[#allocation9 + $0x3a8] ss:$16 sps:$4 sm:$0xff]   ;;  %v3649_v24 = vld [vmem:[#allocation9 + $0x3c4] ss:$16 sps:$4 sm:$0xff]  }
 0x1e8   :  { %1967 = vmatprep.subr.bf16.mxu0 %v3625_v32  ;;  %2049 = vmatprep.subr.bf16.mxu1 %v3627_v28  ;;  %3996 = vst [vmem:[#allocation79_spill] sm:$0xff] %v3649_v24  ;;  %v3651_v32 = vld [vmem:[#allocation9 + $0x3cc] ss:$16 sps:$4 sm:$0xff]   ;;  %v3655_v28 = vld [vmem:[#allocation9 + $0x3c0] ss:$16 sps:$4 sm:$0xff]  }
 0x1eb   :  { %1968 = vmatpush1.bf16.msra.mxu0 %v3631_v16  ;;  %2050 = vmatpush1.bf16.msra.mxu1 %v3633_v21  ;;  %v3657_v16 = vld [vmem:[#allocation9 + $0x3c8] ss:$16 sps:$4 sm:$0xff]   ;;  %v3661_v21 = vld [vmem:[#allocation9 + $0x3e4] ss:$16 sps:$4 sm:$0xff]  }
 0x1ec   :  { %1969 = vmatprep.subr.bf16.mxu0 %v3637_v19  ;;  %2051 = vmatprep.subr.bf16.mxu1 %v3639_v22  ;;  %v3663_v19 = vld [vmem:[#allocation9 + $0x3ec] ss:$16 sps:$4 sm:$0xff]   ;;  %v3667_v22 = vld [vmem:[#allocation9 + $0x3e0] ss:$16 sps:$4 sm:$0xff]  }
 0x1ef   :  { %1970 = vmatpush1.bf16.msra.mxu0 %v3643_v23  ;;  %2052 = vmatpush1.bf16.msra.mxu1 %v3645_v18  ;;  %v3669_v23 = vld [vmem:[#allocation9 + $0x3e8] ss:$16 sps:$4 sm:$0xff]  }
 0x1f0   :  { %1971 = vmatprep.subr.bf16.mxu0 %v3649_v24  ;;  %2053 = vmatprep.subr.bf16.mxu1 %v3651_v32  ;;  %v1132_v24 = vpack.c.bf16 %v3467_v30, %v3467_v30  ;;  %v3997_v30 = vld [vmem:[#allocation14_spill] sm:$0xff] }
 0x1f3   :  { %1972 = vmatpush1.bf16.msra.mxu0 %v3655_v28  ;;  %2054 = vmatpush1.bf16.msra.mxu1 %v3657_v16 }
 0x1f4   :  { %1973 = vmatprep.subr.bf16.mxu0 %v3661_v21  ;;  %2055 = vmatprep.subr.bf16.mxu1 %v3663_v19 }
 0x1f7   :  { %1974 = vmatpush1.bf16.msra.mxu0 %v3667_v22  ;;  %2056 = vmatpush1.bf16.msra.mxu1 %v3669_v23 }
 0x1f8   :  { %2070 = vmatprep.subr.bf16.mxu0 %v3272_v59  ;;  %2152 = vmatprep.subr.bf16.mxu1 %v3274_v61  ;;  %v3998_v59 = vld [vmem:[#allocation15_spill] sm:$0xff]  ;;  %v3999_v61 = vld [vmem:[#allocation16_spill] sm:$0xff] }
 0x1fa   :  { %1976 = vmatmul.mubr.bf16.vlgmr.msra.gmra.mrb[12].mxu0 %v1132_v24  ;;  %2058 = vmatmul.mubr.bf16.vlgmr.msra.gmra.mrb[12].mxu1 %v1132_v24  ;;  %v4028_v24 = vld [vmem:[#allocation44_spill] sm:$0xff] }
 0x1fb   :  { %2071 = vmatpush1.bf16.msra.mxu0 %v3288_v26  ;;  %2153 = vmatpush1.bf16.msra.mxu1 %v3290_v27  ;;  %v4000_v26 = vld [vmem:[#allocation17_spill] sm:$0xff]  ;;  %v4001_v27 = vld [vmem:[#allocation18_spill] sm:$0xff] }
 0x1fc   :  { %2072 = vmatprep.subr.bf16.mxu0 %v3292_v29  ;;  %2154 = vmatprep.subr.bf16.mxu1 %v3294_v31  ;;  %v4002_v29 = vld [vmem:[#allocation19_spill] sm:$0xff]  ;;  %v4003_v31 = vld [vmem:[#allocation20_spill] sm:$0xff] }
 0x1ff   :  { %2073 = vmatpush1.bf16.msra.mxu0 %v3298_v33  ;;  %2155 = vmatpush1.bf16.msra.mxu1 %v3300_v34  ;;  %v4004_v33 = vld [vmem:[#allocation21_spill] sm:$0xff]  ;;  %v4005_v34 = vld [vmem:[#allocation22_spill] sm:$0xff] }
 0x200   :  { %2074 = vmatprep.subr.bf16.mxu0 %v3304_v35  ;;  %2156 = vmatprep.subr.bf16.mxu1 %v3306_v36  ;;  %v4006_v35 = vld [vmem:[#allocation23_spill] sm:$0xff]  ;;  %v4007_v36 = vld [vmem:[#allocation24_spill] sm:$0xff] }
 0x203   :  { %2075 = vmatpush1.bf16.msra.mxu0 %v3310_v37  ;;  %2157 = vmatpush1.bf16.msra.mxu1 %v3312_v38  ;;  %v4008_v37 = vld [vmem:[#allocation25_spill] sm:$0xff]  ;;  %v4009_v38 = vld [vmem:[#allocation26_spill] sm:$0xff] }
 0x204   :  { %2076 = vmatprep.subr.bf16.mxu0 %v3316_v39  ;;  %2158 = vmatprep.subr.bf16.mxu1 %v3318_v40  ;;  %v4010_v39 = vld [vmem:[#allocation27_spill] sm:$0xff]  ;;  %v4011_v40 = vld [vmem:[#allocation13_spill] sm:$0xff] }
 0x207   :  { %2077 = vmatpush1.bf16.msra.mxu0 %v3322_v41  ;;  %2159 = vmatpush1.bf16.msra.mxu1 %v3324_v42  ;;  %v3744_v41 = vsub.s32 0, %v4011_v40  ;;  %v3747_v42 = vsub.s32 2, %v4011_v40 }
 0x208   :  { %2078 = vmatprep.subr.bf16.mxu0 %v3328_v43  ;;  %2160 = vmatprep.subr.bf16.mxu1 %v3330_v44  ;;  %v858_v43 = vld [vmem:[#allocation7] sm:$0xf]  ;;  %v3750_v44 = vsub.s32 1, %v4011_v40 }
 0x20b   :  { %2079 = vmatpush1.bf16.msra.mxu0 %v3334_v45  ;;  %2161 = vmatpush1.bf16.msra.mxu1 %v3336_v46  ;;  %v3753_v45 = vsub.s32 3, %v4011_v40  ;;  %v863_v46 = vrot.slane %v858_v43, %v3744_v41 }
 0x20c   :  { %2080 = vmatprep.subr.bf16.mxu0 %v3340_v47  ;;  %2162 = vmatprep.subr.bf16.mxu1 %v3342_v48  ;;  %v871_v47 = vrot.slane %v858_v43, %v3747_v42  ;;  %v867_v48 = vrot.slane %v858_v43, %v3750_v44 }
 0x20f   :  { %2081 = vmatpush1.bf16.msra.mxu0 %v3346_v49  ;;  %2163 = vmatpush1.bf16.msra.mxu1 %v3348_v50  ;;  %v875_v49 = vrot.slane %v858_v43, %v3753_v45  ;;  %v4043_v43 = vld [vmem:[#allocation59_spill] sm:$0xff] }
 0x210   :  { %2082 = vmatprep.subr.bf16.mxu0 %v3352_v51  ;;  %2164 = vmatprep.subr.bf16.mxu1 %v3354_v52 }
 0x213   :  { %2083 = vmatpush1.bf16.msra.mxu0 %v3358_v53  ;;  %2165 = vmatpush1.bf16.msra.mxu1 %v3360_v54 }
 0x214   :  { %2084 = vmatprep.subr.bf16.mxu0 %v3364_v55  ;;  %2166 = vmatprep.subr.bf16.mxu1 %v3366_v56 }
 0x217   :  { %2085 = vmatpush1.bf16.msra.mxu0 %v3370_v57  ;;  %2167 = vmatpush1.bf16.msra.mxu1 %v3372_v58 }
 0x218   :  { %2086 = vmatprep.subr.bf16.mxu0 %v3376_v60  ;;  %2168 = vmatprep.subr.bf16.mxu1 %v3378_v62 }
 0x21b   :  { %2087 = vmatpush1.bf16.msra.mxu0 %v3382_v63  ;;  %2169 = vmatpush1.bf16.msra.mxu1 %v3384_v0 }
 0x21c   :  { %2088 = vmatprep.subr.bf16.mxu0 %v3388_v1  ;;  %2170 = vmatprep.subr.bf16.mxu1 %v3390_v2 }
 0x21f   :  { %2089 = vmatpush1.bf16.msra.mxu0 %v3394_v3  ;;  %2171 = vmatpush1.bf16.msra.mxu1 %v3396_v4  ;;  %v4012_v3 = vld [vmem:[#allocation28_spill] sm:$0xff]  ;;  %v4013_v4 = vld [vmem:[#allocation29_spill] sm:$0xff] }
 0x220   :  { %2090 = vmatprep.subr.bf16.mxu0 %v3400_v5  ;;  %2172 = vmatprep.subr.bf16.mxu1 %v3402_v6  ;;  %v4014_v5 = vld [vmem:[#allocation30_spill] sm:$0xff]  ;;  %v4015_v6 = vld [vmem:[#allocation31_spill] sm:$0xff] }
 0x223   :  { %2091 = vmatpush1.bf16.msra.mxu0 %v3406_v7  ;;  %2173 = vmatpush1.bf16.msra.mxu1 %v3408_v8  ;;  %v4016_v7 = vld [vmem:[#allocation32_spill] sm:$0xff]  ;;  %v4017_v8 = vld [vmem:[#allocation33_spill] sm:$0xff] }
 0x224   :  { %2092 = vmatprep.subr.bf16.mxu0 %v3412_v9  ;;  %2174 = vmatprep.subr.bf16.mxu1 %v3414_v10  ;;  %v4018_v9 = vld [vmem:[#allocation34_spill] sm:$0xff]  ;;  %v4019_v10 = vld [vmem:[#allocation35_spill] sm:$0xff] }
 0x227   :  { %2093 = vmatpush1.bf16.msra.mxu0 %v3418_v11  ;;  %2175 = vmatpush1.bf16.msra.mxu1 %v3420_v12  ;;  %v4020_v11 = vld [vmem:[#allocation36_spill] sm:$0xff]  ;;  %v4021_v12 = vld [vmem:[#allocation37_spill] sm:$0xff] }
 0x228   :  { %2094 = vmatprep.subr.bf16.mxu0 %v3424_v13  ;;  %2176 = vmatprep.subr.bf16.mxu1 %v3426_v14  ;;  %v4022_v13 = vld [vmem:[#allocation38_spill] sm:$0xff]  ;;  %v4023_v14 = vld [vmem:[#allocation39_spill] sm:$0xff] }
 0x22b   :  { %2095 = vmatpush1.bf16.msra.mxu0 %v3430_v15  ;;  %2177 = vmatpush1.bf16.msra.mxu1 %v3997_v30  ;;  %v4024_v15 = vld [vmem:[#allocation40_spill] sm:$0xff]  ;;  %v4029_v30 = vld [vmem:[#allocation45_spill] sm:$0xff] }
 0x22c   :  { %2096 = vmatprep.subr.bf16.mxu0 %v3998_v59  ;;  %2178 = vmatprep.subr.bf16.mxu1 %v3999_v61  ;;  %v4030_v59 = vld [vmem:[#allocation46_spill] sm:$0xff]  ;;  %v4031_v61 = vld [vmem:[#allocation47_spill] sm:$0xff] }
 0x22f   :  { %2097 = vmatpush1.bf16.msra.mxu0 %v4000_v26  ;;  %2179 = vmatpush1.bf16.msra.mxu1 %v4001_v27  ;;  %v4032_v26 = vld [vmem:[#allocation48_spill] sm:$0xff]  ;;  %v4033_v27 = vld [vmem:[#allocation49_spill] sm:$0xff] }
 0x230   :  { %2098 = vmatprep.subr.bf16.mxu0 %v4002_v29  ;;  %2180 = vmatprep.subr.bf16.mxu1 %v4003_v31  ;;  %v4034_v29 = vld [vmem:[#allocation50_spill] sm:$0xff]  ;;  %v4035_v31 = vld [vmem:[#allocation51_spill] sm:$0xff] }
 0x233   :  { %2099 = vmatpush1.bf16.msra.mxu0 %v4004_v33  ;;  %2181 = vmatpush1.bf16.msra.mxu1 %v4005_v34  ;;  %v4036_v33 = vld [vmem:[#allocation52_spill] sm:$0xff]  ;;  %v4037_v34 = vld [vmem:[#allocation53_spill] sm:$0xff] }
 0x234   :  { %2100 = vmatprep.subr.bf16.mxu0 %v4006_v35  ;;  %2182 = vmatprep.subr.bf16.mxu1 %v4007_v36  ;;  %v4038_v35 = vld [vmem:[#allocation54_spill] sm:$0xff]  ;;  %v4039_v36 = vld [vmem:[#allocation55_spill] sm:$0xff] }
 0x237   :  { %2101 = vmatpush1.bf16.msra.mxu0 %v3471_v20  ;;  %2183 = vmatpush1.bf16.msra.mxu1 %v4008_v37  ;;  %v4026_v20 = vld [vmem:[#allocation42_spill] sm:$0xff]  ;;  %v4040_v37 = vld [vmem:[#allocation56_spill] sm:$0xff] }
 0x238   :  { %2111 = vmatprep.subr.bf16.mxu0 %v4009_v38  ;;  %2193 = vmatprep.subr.bf16.mxu1 %v4010_v39  ;;  %v4041_v38 = vld [vmem:[#allocation57_spill] sm:$0xff]  ;;  %v4042_v39 = vld [vmem:[#allocation58_spill] sm:$0xff] }
 0x24d   :  { %v1074_v50 = vpop.f32.mrb[8].mxu0  ;;  %v1115_v51 = vpop.f32.mrb[8].mxu1 }
 0x24e   :  { %v1075_v52 = vadd.f32 %v1074_v50, %v863_v46  ;;  %v3759_v53 = vadd.f32 %v1115_v51, %v871_v47  ;;  %v1076_v54 = vpop.f32.mrb[9].mxu0  ;;  %v1117_v55 = vpop.f32.mrb[9].mxu1  ;;  %v4044_v46 = vld [vmem:[#allocation60_spill] sm:$0xff]  ;;  %v4045_v47 = vld [vmem:[#allocation61_spill] sm:$0xff] }
 0x24f   :  { %v1077_v56 = vadd.f32 %v1076_v54, %v867_v48  ;;  %v1078_v57 = vpop.f32.mrb[10].mxu0  ;;  %v1119_v58 = vpop.f32.mrb[10].mxu1  ;;  %v1118_v60 = vadd.f32 %v1117_v55, %v875_v49  ;;  %v4046_v48 = vld [vmem:[#allocation62_spill] sm:$0xff]  ;;  %v4047_v49 = vld [vmem:[#allocation63_spill] sm:$0xff]  ;;  %v4048_v50 = vld [vmem:[#allocation64_spill] sm:$0xff] }
 0x250   :  { %v1079_v62 = vpop.f32.mrb[11].mxu0  ;;  %v1120_v63 = vpop.f32.mrb[11].mxu1  ;;  %v2066_v1 = vpack.c.bf16 %v1075_v52, %v1075_v52  ;;  %v4049_v51 = vld [vmem:[#allocation65_spill] sm:$0xff]  ;;  %v4050_v52 = vld [vmem:[#allocation66_spill] sm:$0xff]  ;;  %v4051_v54 = vld [vmem:[#allocation67_spill] sm:$0xff] }
 0x251   :  { %v2067_v0 = vpack.c.bf16 %v1077_v56, %v1077_v56  ;;  %v2069_v2 = vpack.c.bf16 %v1118_v60, %v1118_v60  ;;  %v4052_v55 = vld [vmem:[#allocation68_spill] sm:$0xff]  ;;  %v4053_v56 = vld [vmem:[#allocation69_spill] sm:$0xff]  ;;  %v4054_v57 = vld [vmem:[#allocation70_spill] sm:$0xff] }
 0x252   :  { %v4055_v58 = vld [vmem:[#allocation71_spill] sm:$0xff]  ;;  %v4056_v60 = vld [vmem:[#allocation72_spill] sm:$0xff]  ;;  %v4057_v62 = vld [vmem:[#allocation73_spill] sm:$0xff] }
 0x253   :  { %2102 = vmatprep.mubr.bf16.mxu0 %v2067_v0  ;;  %2184 = vmatprep.mubr.bf16.mxu1 %v2067_v0  ;;  %v4058_v63 = vld [vmem:[#allocation74_spill] sm:$0xff]  ;;  %v4059_v0 = vld [vmem:[#allocation75_spill] sm:$0xff] }
 0x254   :  { %2103 = vmatmul.mubr.bf16.vlgmr.msra.gmra.mrb[16].mxu0 %v2066_v1  ;;  %2185 = vmatmul.mubr.bf16.vlgmr.msra.gmra.mrb[16].mxu1 %v2066_v1  ;;  %v4060_v1 = vld [vmem:[#allocation76_spill] sm:$0xff] }
 0x255   :  { %2112 = vmatpush1.bf16.msra.mxu0 %v3487_v25  ;;  %2194 = vmatpush1.bf16.msra.mxu1 %v3489_v17  ;;  %v4025_v17 = vld [vmem:[#allocation41_spill] sm:$0xff]  ;;  %v4027_v25 = vld [vmem:[#allocation43_spill] sm:$0xff] }
 0x256   :  { %2143 = vmatprep.mubr.bf16.mxu0 %v2069_v2  ;;  %2225 = vmatprep.mubr.bf16.mxu1 %v2069_v2  ;;  %v4061_v2 = vld [vmem:[#allocation77_spill] sm:$0xff] }
 0x257   :  { %2113 = vmatprep.subr.bf16.mxu0 %v4012_v3  ;;  %2195 = vmatprep.subr.bf16.mxu1 %v4013_v4  ;;  %v4062_v3 = vld [vmem:[#allocation78_spill] sm:$0xff]  ;;  %v4063_v4 = vld [vmem:[#allocation79_spill] sm:$0xff] }
 0x259   :  { %2114 = vmatpush1.bf16.msra.mxu0 %v4014_v5  ;;  %2196 = vmatpush1.bf16.msra.mxu1 %v4015_v6  ;;  %v2068_v5 = vpack.c.bf16 %v3759_v53, %v3759_v53 }
 0x25a   :  { %2115 = vmatprep.subr.bf16.mxu0 %v4016_v7  ;;  %2197 = vmatprep.subr.bf16.mxu1 %v4017_v8 }
 0x25d   :  { %2116 = vmatpush1.bf16.msra.mxu0 %v4018_v9  ;;  %2198 = vmatpush1.bf16.msra.mxu1 %v4019_v10 }
 0x25e   :  { %2117 = vmatprep.subr.bf16.mxu0 %v4020_v11  ;;  %2199 = vmatprep.subr.bf16.mxu1 %v4021_v12 }
 0x261   :  { %2118 = vmatpush1.bf16.msra.mxu0 %v4022_v13  ;;  %2200 = vmatpush1.bf16.msra.mxu1 %v4023_v14 }
 0x262   :  { %2119 = vmatprep.subr.bf16.mxu0 %v4024_v15  ;;  %2201 = vmatprep.subr.bf16.mxu1 %v4025_v17 }
 0x265   :  { %2120 = vmatpush1.bf16.msra.mxu0 %v4026_v20  ;;  %2202 = vmatpush1.bf16.msra.mxu1 %v4027_v25 }
 0x266   :  { %2121 = vmatprep.subr.bf16.mxu0 %v4028_v24  ;;  %2203 = vmatprep.subr.bf16.mxu1 %v4029_v30 }
 0x269   :  { %2122 = vmatpush1.bf16.msra.mxu0 %v4030_v59  ;;  %2204 = vmatpush1.bf16.msra.mxu1 %v4031_v61 }
 0x26a   :  { %2123 = vmatprep.subr.bf16.mxu0 %v4032_v26  ;;  %2205 = vmatprep.subr.bf16.mxu1 %v4033_v27 }
 0x26d   :  { %2124 = vmatpush1.bf16.msra.mxu0 %v4034_v29  ;;  %2206 = vmatpush1.bf16.msra.mxu1 %v4035_v31 }
 0x26e   :  { %2125 = vmatprep.subr.bf16.mxu0 %v4036_v33  ;;  %2207 = vmatprep.subr.bf16.mxu1 %v4037_v34 }
 0x271   :  { %2126 = vmatpush1.bf16.msra.mxu0 %v4038_v35  ;;  %2208 = vmatpush1.bf16.msra.mxu1 %v4039_v36 }
 0x272   :  { %2127 = vmatprep.subr.bf16.mxu0 %v4040_v37  ;;  %2209 = vmatprep.subr.bf16.mxu1 %v4041_v38 }
 0x275   :  { %2128 = vmatpush1.bf16.msra.mxu0 %v4042_v39  ;;  %2210 = vmatpush1.bf16.msra.mxu1 %v4043_v43 }
 0x276   :  { %2129 = vmatprep.subr.bf16.mxu0 %v4044_v46  ;;  %2211 = vmatprep.subr.bf16.mxu1 %v4045_v47 }
 0x279   :  { %2130 = vmatpush1.bf16.msra.mxu0 %v4046_v48  ;;  %2212 = vmatpush1.bf16.msra.mxu1 %v4047_v49 }
 0x27a   :  { %2131 = vmatprep.subr.bf16.mxu0 %v4048_v50  ;;  %2213 = vmatprep.subr.bf16.mxu1 %v4049_v51 }
 0x27d   :  { %2132 = vmatpush1.bf16.msra.mxu0 %v4050_v52  ;;  %2214 = vmatpush1.bf16.msra.mxu1 %v4051_v54 }
 0x27e   :  { %2133 = vmatprep.subr.bf16.mxu0 %v4052_v55  ;;  %2215 = vmatprep.subr.bf16.mxu1 %v4053_v56 }
 0x281   :  { %2134 = vmatpush1.bf16.msra.mxu0 %v4054_v57  ;;  %2216 = vmatpush1.bf16.msra.mxu1 %v4055_v58 }
 0x282   :  { %2135 = vmatprep.subr.bf16.mxu0 %v4056_v60  ;;  %2217 = vmatprep.subr.bf16.mxu1 %v4057_v62 }
 0x285   :  { %2136 = vmatpush1.bf16.msra.mxu0 %v4058_v63  ;;  %2218 = vmatpush1.bf16.msra.mxu1 %v4059_v0 }
 0x286   :  { %2137 = vmatprep.subr.bf16.mxu0 %v4060_v1  ;;  %2219 = vmatprep.subr.bf16.mxu1 %v4061_v2 }
 0x289   :  { %2138 = vmatpush1.bf16.msra.mxu0 %v4062_v3  ;;  %2220 = vmatpush1.bf16.msra.mxu1 %v3645_v18 }
 0x28a   :  { %2139 = vmatprep.subr.bf16.mxu0 %v4063_v4  ;;  %2221 = vmatprep.subr.bf16.mxu1 %v3651_v32 }
 0x28d   :  { %2140 = vmatpush1.bf16.msra.mxu0 %v3655_v28  ;;  %2222 = vmatpush1.bf16.msra.mxu1 %v3657_v16 }
 0x28e   :  { %2141 = vmatprep.subr.bf16.mxu0 %v3661_v21  ;;  %2223 = vmatprep.subr.bf16.mxu1 %v3663_v19  ;;  %v3162_v21 = vmov 1966171168  }
 0x28f   :  { %v2241_v10 = vunpack.c.l.s4 %v3162_v21 }
 0x291   :  { %2142 = vmatpush1.bf16.msra.mxu0 %v3667_v22  ;;  %2224 = vmatpush1.bf16.msra.mxu1 %v3669_v23  ;;  %v2242_v19 = vunpack.c.0.s8 %v2241_v10 }
 0x293   :  { %v2245_v23 = vsub.s32 %v2242_v19, %v4011_v40 }
 0x294   :  { %2144 = vmatmul.mubr.bf16.vlgmr.msra.gmra.mrb[16].mxu0 %v2068_v5  ;;  %2226 = vmatmul.mubr.bf16.vlgmr.msra.gmra.mrb[16].mxu1 %v2068_v5 }
 0x2cd   :  { %v1977_v18 = vpop.f32.mrb[12].mxu0  ;;  %v2059_v6 = vpop.f32.mrb[12].mxu1 }
 0x2ce   :  { %v1979_v32 = vpop.f32.mrb[13].mxu0  ;;  %v2061_v7 = vpop.f32.mrb[13].mxu1 }
 0x2cf   :  { %v1981_v28 = vpop.f32.mrb[14].mxu0  ;;  %v2063_v8 = vpop.f32.mrb[14].mxu1 }
 0x2d0   :  { %v1982_v16 = vpop.f32.mrb[15].mxu0  ;;  %v2064_v9 = vpop.f32.mrb[15].mxu1 }
 0x367   :  { %v2145_v11 = vpop.f32.mrb[16].mxu0  ;;  %v2227_v22 = vpop.f32.mrb[16].mxu1 }
 0x368   :  { %v2147_v12 = vpop.f32.mrb[17].mxu0  ;;  %v2229_v13 = vpop.f32.mrb[17].mxu1 }
 0x369   :  { %v2238_v53 = vcombine.low %v2145_v11, %v2147_v12  ;;  %v2239_v14 = vcombine.low %v2227_v22, %v2229_v13  ;;  %v2149_v15 = vpop.f32.mrb[18].mxu0  ;;  %v2231_v17 = vpop.f32.mrb[18].mxu1 }
 0x36a   :  { %v2150_v20 = vpop.f32.mrb[19].mxu0  ;;  %v2232_v25 = vpop.f32.mrb[19].mxu1 }
 0x36b   :  { %v2246_v24 = vrot.slane %v2238_v53, %v2245_v23  ;;  %v2253_v30 = vrot.slane %v2239_v14, %v2245_v23 }
 0x36d   :  { %v2254_v59 = vcombine.low %v2246_v24, %v2253_v30  ;;  %v2255_v61 = vcombine.high %v2246_v24, %v2253_v30 }
 0x36f   :  { %v2262_v26 = vrot.slane %v2254_v59, %v2245_v23  ;;  %v2269_v27 = vrot.slane %v2255_v61, %v2245_v23 }
 0x371   :  { %v2273_v29 = vrot.slane %v2262_v26, %v3744_v41  ;;  %v2277_v31 = vrot.slane %v2262_v26, %v3750_v44  ;;  %v2281_v40 = vrot.slane %v2262_v26, %v3747_v42  ;;  %v2285_v33 = vrot.slane %v2262_v26, %v3753_v45 }
 0x372   :  { %v2289_v34 = vrot.slane %v2269_v27, %v3744_v41  ;;  %v2293_v35 = vrot.slane %v2269_v27, %v3750_v44  ;;  %v2297_v36 = vrot.slane %v2269_v27, %v3747_v42  ;;  %v2301_v37 = vrot.slane %v2269_v27, %v3753_v45 }
 0x373   :  { %v2310_v38 = vadd.f32 %v2273_v29, %v1977_v18  ;;  %v2311_v39 = vadd.f32 %v2277_v31, %v1979_v32  ;;  %v2312_v43 = vadd.f32 %v2281_v40, %v2059_v6  ;;  %v2313_v46 = vadd.f32 %v2285_v33, %v2061_v7 }
 0x374   :  { %v2314_v47 = vadd.f32 %v2289_v34, %v1977_v18  ;;  %v2315_v48 = vadd.f32 %v2293_v35, %v1979_v32  ;;  %v2316_v49 = vadd.f32 %v2297_v36, %v2059_v6  ;;  %v2317_v50 = vadd.f32 %v2301_v37, %v2061_v7 }
 0x375   :  { %v2318_v51 = vmul.f32 %v2310_v38, %v2310_v38  ;;  %v2319_v52 = vmul.f32 %v2311_v39, %v2311_v39  ;;  %v2320_v54 = vmul.f32 %v2312_v43, %v2312_v43  ;;  %v2321_v41 = vmul.f32 %v2313_v46, %v2313_v46 }
 0x376   :  { %v2322_v55 = vmul.f32 %v2314_v47, %v2314_v47  ;;  %v2323_v56 = vmul.f32 %v2315_v48, %v2315_v48  ;;  %v2324_v57 = vmul.f32 %v2316_v49, %v2316_v49  ;;  %v2325_v2 = vmul.f32 %v2317_v50, %v2317_v50 }
 0x377   :  { %v2327_v44 = vsel %vm2326_vm0, %v2318_v51, 0.0  ;;  %v2328_v42 = vsel %vm2326_vm0, %v2319_v52, 0.0  ;;  %v2330_v62 = vsel %vm2326_vm0, %v2320_v54, 0.0  ;;  %v2332_v1 = vsel %vm2326_vm0, %v2321_v41, 0.0 }
 0x378   :  { %v2329_v45 = vadd.f32 %v2328_v42, %v2327_v44  ;;  %v2336_v58 = vsel %vm2326_vm0, %v2322_v55, 0.0  ;;  %v2337_v60 = vsel %vm2326_vm0, %v2323_v56, 0.0  ;;  %v2339_v3 = vsel %vm2326_vm0, %v2324_v57, 0.0 }
 0x379   :  { %v2338_v63 = vadd.f32 %v2337_v60, %v2336_v58  ;;  %v2341_v18 = vsel %vm2326_vm0, %v2325_v2, 0.0 }
 0x37a   :  { %v2331_v0 = vadd.f32 %v2330_v62, %v2329_v45 }
 0x37b   :  { %v2340_v5 = vadd.f32 %v2339_v3, %v2338_v63 }
 0x37c   :  { %v2333_v4 = vadd.f32 %v2332_v1, %v2331_v0 }
 0x37d   :  { %v2342_v6 = vadd.f32 %v2341_v18, %v2340_v5 }
 0x37e   :  { %2334 = vadd.xlane.f32.xlu0 %v2333_v4 }
 0x382   :  { %2343 = vadd.xlane.f32.xlu0 %v2342_v6 }
 0x40b   :  { %v2335_v32 = vpop.xlane.xlu0 %2334 }
 0x40c   :  { %3031 = vrsqrt.f32 %v2335_v32 }
 0x40f   :  { %v2344_v7 = vpop.xlane.xlu0 %2343 }
 0x410   :  { %3033 = vrsqrt.f32 %v2344_v7 }
 0x416   :  { %v3032_v28 = vpop.eup %3031 }
 0x417   :  { %v2347_v8 = vmul.f32 %v3032_v28, %v2310_v38  ;;  %v2348_v16 = vmul.f32 %v3032_v28, %v2311_v39  ;;  %v2349_v9 = vmul.f32 %v3032_v28, %v2312_v43  ;;  %v2350_v21 = vmul.f32 %v3032_v28, %v2313_v46 }
 0x419   :  { %v2363_v10 = vcombine.low %v2347_v8, %v2348_v16  ;;  %v2364_v19 = vcombine.low %v2349_v9, %v2350_v21 }
 0x41a   :  { %v3034_v11 = vpop.eup %3033 }
 0x41b   :  { %2371 = vst [vmem:[%s3861_s7] sm:$0x77] %v2363_v10  ;;  %2372 = vst [vmem:[%s3861_s7 + $0x8] sm:$0x77] %v2364_v19  ;;  %v2351_v22 = vmul.f32 %v3034_v11, %v2314_v47  ;;  %v2352_v23 = vmul.f32 %v3034_v11, %v2315_v48  ;;  %v2353_v12 = vmul.f32 %v3034_v11, %v2316_v49 }
 0x41c   :  { %v2354_v13 = vmul.f32 %v3034_v11, %v2317_v50 }
 0x41d   :  { %v2365_v53 = vcombine.low %v2351_v22, %v2352_v23 }
 0x41e   :  { %v2366_v14 = vcombine.low %v2353_v12, %v2354_v13 }
 0x41f   :  { %2373 = vst [vmem:[%s3861_s7 + $0x10] sm:$0x77] %v2365_v53 }
 0x420   :  { %2374 = vst [vmem:[%s3861_s7 + $0x18] sm:$0x77] %v2366_v14 }
 0x421   :  { %2379 = vsyncpa [#allocation3], 1 }
 0x422   :  { %2380 = vsyncpa [#allocation5], 1 }
 0x423   :  { %2381 = vsyncpa [#allocation8], 1 }

</bundles_post_ra>
